<compile_context>
chip_gen: v7x
topology: tpu7x:2x2x1
jax: 0.10.0
libtpu: 0.0.40
codegen_flags: <defaults>
</compile_context>

<pallas_src>
import functools
import math

import jax
import jax.numpy as jnp
from jax.experimental import pallas as pl
from jax.experimental.pallas import tpu as pltpu

TM_MAX = 512      # max M-tile (rows of the im2col matrix) per grid step
LANE = 128        # lane alignment for K / Cout


def _round_up(x, m):
    return (x + m - 1) // m * m


def _k_tiling(K):
    """K padded to a lane multiple; TK = largest of {512,384,256,128} dividing it."""
    Kp = _round_up(K, LANE)
    for t in (512, 384, 256, 128):
        if Kp % t == 0:
            return t, Kp
    return 128, Kp


def _n_tile(Np):
    """N (Cout) tile: keep >=2 lane tiles when possible (megacore), <=256 lanes."""
    if Np <= 128:
        return Np
    if Np % 256 == 0:
        return min(256, Np // 2)
    return 128


def _m_tiling(M):
    TM = min(TM_MAX, _round_up(M, 16))
    Mp = _round_up(M, TM)
    return TM, Mp


# ----------------------------------------------------------------------------
# Pallas kernels: K-accumulated (bf16 patches @ bf16 weight) -> f32 acc,
# then * bn_scale + bn_bias, activation, optional residual add at k == last.
# ----------------------------------------------------------------------------
def _activate(acc, act):
    if act == "silu":
        return acc * pl.reciprocal(1.0 + jnp.exp(-acc), approx=True)
    if act == "relu":
        return jnp.maximum(acc, 0.0)
    return acc


def _mm_kernel(p_ref, w_ref, s_ref, b_ref, o_ref, acc_ref, *, act):
    k = pl.program_id(2)

    @pl.when(k == 0)
    def _():
        acc_ref[...] = jnp.zeros_like(acc_ref)

    acc_ref[...] += jnp.dot(p_ref[...], w_ref[...],
                            preferred_element_type=jnp.float32)

    @pl.when(k == pl.num_programs(2) - 1)
    def _():
        acc = _activate(acc_ref[...] * s_ref[...] + b_ref[...], act)
        o_ref[...] = acc.astype(o_ref.dtype)


def _mm_res_kernel(p_ref, w_ref, s_ref, b_ref, r_ref, o_ref, acc_ref, *, act):
    k = pl.program_id(2)

    @pl.when(k == 0)
    def _():
        acc_ref[...] = jnp.zeros_like(acc_ref)

    acc_ref[...] += jnp.dot(p_ref[...], w_ref[...],
                            preferred_element_type=jnp.float32)

    @pl.when(k == pl.num_programs(2) - 1)
    def _():
        acc = _activate(acc_ref[...] * s_ref[...] + b_ref[...], act)
        acc = acc + r_ref[...].astype(jnp.float32)
        o_ref[...] = acc.astype(o_ref.dtype)


# ----------------------------------------------------------------------------
# Conv = im2col (glue) + Pallas tiled matmul kernel (hot path)
# ----------------------------------------------------------------------------
def _im2col(x, k, s, pad):
    # x: [N, H, W, C] -> patches [N*Ho*Wo, k*k*C], ordering (kh, kw, C)
    N, H, W, C = x.shape
    xp = jnp.pad(x, ((0, 0), (pad, pad), (pad, pad), (0, 0)))
    Ho = (H + 2 * pad - k) // s + 1
    Wo = (W + 2 * pad - k) // s + 1
    cols = []
    for i in range(k):
        for j in range(k):
            cols.append(xp[:, i:i + s * Ho:s, j:j + s * Wo:s, :])
    patches = jnp.concatenate(cols, axis=-1)
    return patches.reshape(N * Ho * Wo, k * k * C), (N, Ho, Wo)


def _conv_core(x, w_p, scale_p, bias_p, res, k, s, pad, act, cout):
    P, (N, Ho, Wo) = _im2col(x, k, s, pad)
    M, K = P.shape
    Kp, Np = w_p.shape                 # weight is pre-padded + bf16
    TK, Kp_chk = _k_tiling(K)
    assert Kp == Kp_chk, "weight K-padding inconsistent with call site"
    TN = _n_tile(Np)
    TM, Mp = _m_tiling(M)

    Pp = jnp.pad(P, ((0, Mp - M), (0, Kp - K))).astype(jnp.bfloat16)

    grid = (Mp // TM, Np // TN, Kp // TK)
    in_specs = [
        pl.BlockSpec((TM, TK), lambda i, j, kk: (i, kk)),
        pl.BlockSpec((TK, TN), lambda i, j, kk: (kk, j)),
        pl.BlockSpec((1, TN), lambda i, j, kk: (0, j)),
        pl.BlockSpec((1, TN), lambda i, j, kk: (0, j)),
    ]
    out_spec = pl.BlockSpec((TM, TN), lambda i, j, kk: (i, j))
    out_shape = jax.ShapeDtypeStruct((Mp, Np), jnp.float32)
    scratch = [pltpu.VMEM((TM, TN), jnp.float32)]
    cparams = pltpu.CompilerParams(
        dimension_semantics=("parallel", "parallel", "arbitrary"))

    if res is None:
        out = pl.pallas_call(
            functools.partial(_mm_kernel, act=act),
            out_shape=out_shape,
            grid_spec=pltpu.PrefetchScalarGridSpec(
                num_scalar_prefetch=0, grid=grid,
                in_specs=in_specs, out_specs=out_spec,
                scratch_shapes=scratch),
            compiler_params=cparams,
        )(Pp, w_p, scale_p, bias_p)
    else:
        Rp = jnp.pad(res.reshape(M, cout), ((0, Mp - M), (0, Np - cout)))
        out = pl.pallas_call(
            functools.partial(_mm_res_kernel, act=act),
            out_shape=out_shape,
            grid_spec=pltpu.PrefetchScalarGridSpec(
                num_scalar_prefetch=0, grid=grid,
                in_specs=in_specs
                + [pl.BlockSpec((TM, TN), lambda i, j, kk: (i, j))],
                out_specs=out_spec,
                scratch_shapes=scratch),
            compiler_params=cparams,
        )(Pp, w_p, scale_p, bias_p, Rp)

    return out[:M, :cout].reshape(N, Ho, Wo, cout)


@functools.partial(jax.jit, static_argnames=("k", "s", "p", "act", "cout"))
def conv_bn_act(x, w, scale, bias, *, k, s, p, act, cout):
    return _conv_core(x, w, scale, bias, None, k, s, p, act, cout)


@functools.partial(jax.jit, static_argnames=("k", "s", "p", "act", "cout"))
def conv_bn_act_res(x, w, scale, bias, res, *, k, s, p, act, cout):
    return _conv_core(x, w, scale, bias, res, k, s, p, act, cout)


# ----------------------------------------------------------------------------
# Parameter construction (deterministic, kaiming fan_out init; BN gamma=1,
# beta=0 folded with running stats mean=0, var=1, eps=1e-3).  Weights are
# stored matmul-ready: reshaped to (K, Cout), zero-padded to lane-aligned
# (Kp, Np) and cast to bf16; scale/bias padded to (1, Np) f32.
# ----------------------------------------------------------------------------
class KeyGen:
    def __init__(self, seed=0):
        self._key = jax.random.PRNGKey(seed)

    def __call__(self):
        self._key, sub = jax.random.split(self._key)
        return sub


def make_conv(kg, cin, cout, k, bn=True):
    fan_out = cout * k * k
    w = jax.random.normal(kg(), (k, k, cin, cout), jnp.float32) * math.sqrt(2.0 / fan_out)
    K = k * k * cin
    _, Kp = _k_tiling(K)
    Np = _round_up(cout, LANE)
    Wp = jnp.pad(w.reshape(K, cout), ((0, Kp - K), (0, Np - cout))).astype(jnp.bfloat16)
    if bn:
        scale = jnp.full((cout,), 1.0 / math.sqrt(1.0 + 1e-3), jnp.float32)
    else:
        scale = jnp.ones((cout,), jnp.float32)
    bias = jnp.zeros((cout,), jnp.float32)
    sp = jnp.pad(scale, (0, Np - cout)).reshape(1, Np)
    bp = jnp.pad(bias, (0, Np - cout)).reshape(1, Np)
    return {"w": Wp, "scale": sp, "bias": bp, "k": k, "cin": cin, "cout": cout}


def apply_conv(p, x, s=1, act="silu", res=None):
    k = p["k"]
    pad = k // 2
    if res is None:
        return conv_bn_act(x, p["w"], p["scale"], p["bias"],
                           k=k, s=s, p=pad, act=act, cout=p["cout"])
    return conv_bn_act_res(x, p["w"], p["scale"], p["bias"], res,
                           k=k, s=s, p=pad, act=act, cout=p["cout"])


# --------------------------- YOLO-style blocks -------------------------------
def make_bottleneck(kg, c1, c2, shortcut=True, kpair=(3, 3), e=0.5):
    c_ = int(c2 * e)
    return {"cv1": make_conv(kg, c1, c_, kpair[0]),
            "cv2": make_conv(kg, c_, c2, kpair[1]),
            "add": bool(shortcut and c1 == c2)}


def apply_bottleneck(p, x):
    y = apply_conv(p["cv1"], x)
    if p["add"]:
        return apply_conv(p["cv2"], y, res=x)
    return apply_conv(p["cv2"], y)


def make_c3k(kg, c1, c2, n=2, shortcut=True, e=0.5, k=3):
    c_ = int(c2 * e)
    return {"cv1": make_conv(kg, c1, c_, 1),
            "cv2": make_conv(kg, c1, c_, 1),
            "cv3": make_conv(kg, 2 * c_, c2, 1),
            "m": [make_bottleneck(kg, c_, c_, shortcut, (k, k), 1.0) for _ in range(n)]}


def apply_c3k(p, x):
    a = apply_conv(p["cv1"], x)
    for b in p["m"]:
        a = apply_bottleneck(b, a)
    b2 = apply_conv(p["cv2"], x)
    return apply_conv(p["cv3"], jnp.concatenate([a, b2], axis=-1))


def make_c3k2(kg, c1, c2, n, c3k=False, e=0.5, shortcut=True):
    c = int(c2 * e)
    blocks = []
    for _ in range(n):
        if c3k:
            blocks.append(("c3k", make_c3k(kg, c, c, 2, shortcut)))
        else:
            blocks.append(("bn", make_bottleneck(kg, c, c, shortcut, (3, 3), 0.5)))
    return {"cv1": make_conv(kg, c1, 2 * c, 1),
            "cv2": make_conv(kg, (2 + n) * c, c2, 1),
            "m": blocks, "c": c}


def apply_c3k2(p, x):
    y = apply_conv(p["cv1"], x)
    c = p["c"]
    ys = [y[..., :c], y[..., c:]]
    for kind, bp in p["m"]:
        ys.append(apply_c3k(bp, ys[-1]) if kind == "c3k" else apply_bottleneck(bp, ys[-1]))
    return apply_conv(p["cv2"], jnp.concatenate(ys, axis=-1))


# --------------------- EIEM_Faster (FasterNet-style) blocks ------------------
def make_faster_block(kg, dim, n_div=4, mlp_ratio=2):
    dim_conv = dim // n_div
    hidden = dim * mlp_ratio
    return {"pconv": make_conv(kg, dim_conv, dim_conv, 3, bn=False),
            "fc1": make_conv(kg, dim, hidden, 1),
            "fc2": make_conv(kg, hidden, dim, 1, bn=False),
            "dim_conv": dim_conv}


def apply_faster_block(p, x):
    dc = p["dim_conv"]
    x1 = apply_conv(p["pconv"], x[..., :dc], act="none")   # partial 3x3 conv
    xm = jnp.concatenate([x1, x[..., dc:]], axis=-1)
    h = apply_conv(p["fc1"], xm, act="relu")
    return apply_conv(p["fc2"], h, act="none", res=x)      # residual


def make_c3k2_eiem_faster(kg, c1, c2, n, e=0.5):
    c = int(c2 * e)
    return {"cv1": make_conv(kg, c1, 2 * c, 1),
            "cv2": make_conv(kg, (2 + n) * c, c2, 1),
            "m": [make_faster_block(kg, c) for _ in range(n)],
            "c": c}


def apply_c3k2_eiem_faster(p, x):
    y = apply_conv(p["cv1"], x)
    c = p["c"]
    ys = [y[..., :c], y[..., c:]]
    for bp in p["m"]:
        ys.append(apply_faster_block(bp, ys[-1]))
    return apply_conv(p["cv2"], jnp.concatenate(ys, axis=-1))


# ------------------------------- FPN ------------------------------------------
def make_fpn(kg, chs):   # chs = [c3, c4, c5] channel counts
    c3c, c4c, c5c = chs
    return {"merge4": make_c3k2_eiem_faster(kg, c5c + c4c, c4c, 1),
            "merge3": make_c3k2_eiem_faster(kg, c4c + c3c, c3c, 1)}


def upsample2(x):   # nearest 2x, NHWC
    return jnp.repeat(jnp.repeat(x, 2, axis=1), 2, axis=2)


def apply_fpn(p, feats):
    c3, c4, c5 = feats
    p4 = apply_c3k2_eiem_faster(p["merge4"], jnp.concatenate([upsample2(c5), c4], axis=-1))
    p3 = apply_c3k2_eiem_faster(p["merge3"], jnp.concatenate([upsample2(p4), c3], axis=-1))
    return [p3, p4]


# ------------------------------- Full model ----------------------------------
def make_model(seed=0):
    kg = KeyGen(seed)
    width = 0.75
    channels = [int(c * width) for c in [64, 128, 256, 512, 1024]]   # [48,96,192,384,768]
    depth = [3, 6, 9, 3, 2]
    params = {
        "stage1": {"conv1": make_conv(kg, 3, channels[0], 7),
                   "conv2": make_conv(kg, channels[0], channels[1], 3),
                   "c3k2": make_c3k2(kg, channels[1], channels[2], depth[0], False, 0.25)},
        "stage2": {"conv": make_conv(kg, channels[2], channels[2], 3),
                   "c3k2": make_c3k2(kg, channels[2], channels[3], depth[1], False, 0.25)},
        "stage3": {"conv": make_conv(kg, channels[3], channels[3], 3),
                   "c3k2": make_c3k2(kg, channels[3], channels[3], depth[2], True)},
        "stage4": {"conv": make_conv(kg, channels[3], channels[4], 3),
                   "c3k2": make_c3k2_eiem_faster(kg, channels[4], channels[4], depth[3])},
        "fpn": make_fpn(kg, [channels[3], channels[3], channels[4]]),
    }
    return params


def forward(params, x_nchw):
    x = jnp.transpose(x_nchw, (0, 2, 3, 1))            # NCHW -> NHWC
    s1 = params["stage1"]
    c2 = apply_conv(s1["conv1"], x, s=2)
    c2 = apply_conv(s1["conv2"], c2, s=2)
    c2 = apply_c3k2(s1["c3k2"], c2)
    s2 = params["stage2"]
    c3 = apply_conv(s2["conv"], c2, s=2)
    c3 = apply_c3k2(s2["c3k2"], c3)
    s3 = params["stage3"]
    c4 = apply_conv(s3["conv"], c3, s=2)
    c4 = apply_c3k2(s3["c3k2"], c4)
    s4 = params["stage4"]
    c5 = apply_conv(s4["conv"], c4, s=2)
    c5 = apply_c3k2_eiem_faster(s4["c3k2"], c5)
    p3, p4 = apply_fpn(params["fpn"], [c3, c4, c5])
    # NHWC -> NCHW to match PyTorch output convention
    return [jnp.transpose(p3, (0, 3, 1, 2)), jnp.transpose(p4, (0, 3, 1, 2))]


if __name__ == "__main__":
    key = jax.random.PRNGKey(0)
    x = jax.random.normal(key, (1, 3, 64, 64), jnp.float32)   # NCHW, small but /32-compatible
    params = make_model(seed=0)
    outs = forward(params, x)
    outs = jax.block_until_ready(outs)
    assert outs[0].shape == (1, 384, 8, 8) and outs[1].shape == (1, 384, 4, 4)
    assert all(bool(jnp.all(jnp.isfinite(o))) for o in outs)
    print("KERNEL_OK")
</pallas_src>

<mosaic_0001>
module attributes {stable_mosaic.version = 11 : i64} {
  func.func @_mm_kernel(%arg0: i32, %arg1: i32, %arg2: i32, %arg3: memref<512x256xbf16, #tpu.memory_space<vmem>>, %arg4: memref<256x128xbf16, #tpu.memory_space<vmem>>, %arg5: memref<1x128xf32, #tpu.memory_space<vmem>>, %arg6: memref<1x128xf32, #tpu.memory_space<vmem>>, %arg7: memref<512x128xf32, #tpu.memory_space<vmem>>, %arg8: memref<512x128xf32, #tpu.memory_space<vmem>>) attributes {dimension_semantics = [#tpu.dimension_semantics<parallel>, #tpu.dimension_semantics<parallel>, #tpu.dimension_semantics<arbitrary>], iteration_bounds = array<i64: 2, 1, 1>, scalar_prefetch = 0 : i64, scratch_operands = 1 : i64, tpu.core_type = #tpu.core_type<tc>, window_params = [{transform_indices = @transform_0, window_bounds = array<i64: 512, 256>}, {transform_indices = @transform_1, window_bounds = array<i64: 256, 128>}, {transform_indices = @transform_2, window_bounds = array<i64: 1, 128>}, {transform_indices = @transform_3, window_bounds = array<i64: 1, 128>}, {transform_indices = @transform_4, window_bounds = array<i64: 512, 128>}]} {
    %c0_i32 = arith.constant 0 : i32
    %0 = arith.cmpi eq, %arg2, %c0_i32 : i32
    %1 = arith.extui %0 : i1 to i32
    %c0_i32_0 = arith.constant 0 : i32
    %2 = arith.cmpi ne, %1, %c0_i32_0 : i32
    scf.if %2 {
      %cst_10 = arith.constant 0.000000e+00 : f32
      %12 = vector.broadcast %cst_10 : f32 to vector<512x128xf32>
      %c0_11 = arith.constant 0 : index
      %c0_12 = arith.constant 0 : index
      %13 = vector.load %arg8[%c0_11, %c0_12] : memref<512x128xf32, #tpu.memory_space<vmem>>, vector<512x128xf32>
      tpu.vector_store %arg8[%c0_11, %c0_12], %12 {strides = array<i32>} : memref<512x128xf32, #tpu.memory_space<vmem>>, vector<512x128xf32>,
    } else {
    }
    %c0 = arith.constant 0 : index
    %c0_1 = arith.constant 0 : index
    %3 = vector.load %arg8[%c0, %c0_1] : memref<512x128xf32, #tpu.memory_space<vmem>>, vector<512x128xf32>
    %c0_2 = arith.constant 0 : index
    %c0_3 = arith.constant 0 : index
    %4 = vector.load %arg3[%c0_2, %c0_3] : memref<512x256xbf16, #tpu.memory_space<vmem>>, vector<512x256xbf16>
    %c0_4 = arith.constant 0 : index
    %c0_5 = arith.constant 0 : index
    %5 = vector.load %arg4[%c0_4, %c0_5] : memref<256x128xbf16, #tpu.memory_space<vmem>>, vector<256x128xbf16>
    %cst = arith.constant dense<0.000000e+00> : vector<512x128xf32>
    %6 = tpu.matmul %4, %5, %cst {dimension_numbers = #tpu.dot_dimension_numbers<[1], [0], [0], [1], [0, 0, 1, 1], [], []>} : vector<512x256xbf16>, vector<256x128xbf16>, vector<512x128xf32> -> vector<512x128xf32>
    %7 = arith.addf %3, %6 : vector<512x128xf32>
    %c0_6 = arith.constant 0 : index
    %c0_7 = arith.constant 0 : index
    %8 = vector.load %arg8[%c0_6, %c0_7] : memref<512x128xf32, #tpu.memory_space<vmem>>, vector<512x128xf32>
    tpu.vector_store %arg8[%c0_6, %c0_7], %7 {strides = array<i32>} : memref<512x128xf32, #tpu.memory_space<vmem>>, vector<512x128xf32>,
    %c0_i32_8 = arith.constant 0 : i32
    %9 = arith.cmpi eq, %arg2, %c0_i32_8 : i32
    %10 = arith.extui %9 : i1 to i32
    %c0_i32_9 = arith.constant 0 : i32
    %11 = arith.cmpi ne, %10, %c0_i32_9 : i32
    scf.if %11 {
      %c0_10 = arith.constant 0 : index
      %c0_11 = arith.constant 0 : index
      %12 = vector.load %arg8[%c0_10, %c0_11] : memref<512x128xf32, #tpu.memory_space<vmem>>, vector<512x128xf32>
      %c0_12 = arith.constant 0 : index
      %c0_13 = arith.constant 0 : index
      %13 = vector.load %arg5[%c0_12, %c0_13] : memref<1x128xf32, #tpu.memory_space<vmem>>, vector<1x128xf32>
      %14 = vector.broadcast %13 : vector<1x128xf32> to vector<512x128xf32>
      %15 = arith.mulf %12, %14 : vector<512x128xf32>
      %c0_14 = arith.constant 0 : index
      %c0_15 = arith.constant 0 : index
      %16 = vector.load %arg6[%c0_14, %c0_15] : memref<1x128xf32, #tpu.memory_space<vmem>>, vector<1x128xf32>
      %17 = vector.broadcast %16 : vector<1x128xf32> to vector<512x128xf32>
      %18 = arith.addf %15, %17 : vector<512x128xf32>
      %cst_16 = arith.constant 0.000000e+00 : f32
      %19 = vector.broadcast %cst_16 : f32 to vector<512x128xf32>
      %20 = arith.subf %19, %18 : vector<512x128xf32>
      %21 = math.exp %20 : vector<512x128xf32>
      %cst_17 = arith.constant 1.000000e+00 : f32
      %22 = vector.broadcast %cst_17 : f32 to vector<512x128xf32>
      %23 = arith.addf %22, %21 : vector<512x128xf32>
      %24 = tpu.reciprocal %23 {approx = true} : vector<512x128xf32> -> vector<512x128xf32>
      %25 = arith.mulf %18, %24 : vector<512x128xf32>
      %c0_18 = arith.constant 0 : index
      %c0_19 = arith.constant 0 : index
      %26 = vector.load %arg7[%c0_18, %c0_19] : memref<512x128xf32, #tpu.memory_space<vmem>>, vector<512x128xf32>
      tpu.vector_store %arg7[%c0_18, %c0_19], %25 {strides = array<i32>} : memref<512x128xf32, #tpu.memory_space<vmem>>, vector<512x128xf32>,
    } else {
    }
    return
  }
  func.func @transform_0(%arg0: i32, %arg1: i32, %arg2: i32) -> (i32, i32) {
    %c0_i32 = arith.constant 0 : i32
    return %arg0, %arg2 : i32, i32
  }
  func.func @transform_1(%arg0: i32, %arg1: i32, %arg2: i32) -> (i32, i32) {
    %c0_i32 = arith.constant 0 : i32
    return %arg2, %arg1 : i32, i32
  }
  func.func @transform_2(%arg0: i32, %arg1: i32, %arg2: i32) -> (i32, i32) {
    %c0_i32 = arith.constant 0 : i32
    %c0_i32_0 = arith.constant 0 : i32
    return %c0_i32, %arg1 : i32, i32
  }
  func.func @transform_3(%arg0: i32, %arg1: i32, %arg2: i32) -> (i32, i32) {
    %c0_i32 = arith.constant 0 : i32
    %c0_i32_0 = arith.constant 0 : i32
    return %c0_i32, %arg1 : i32, i32
  }
  func.func @transform_4(%arg0: i32, %arg1: i32, %arg2: i32) -> (i32, i32) {
    %c0_i32 = arith.constant 0 : i32
    return %arg0, %arg1 : i32, i32
  }
}

</mosaic_0001>

<bundles_post_ra>
// kernel: conv_bn_act.1
= control target key start
LH: loop header
LB: loop body
LE: loop exit
PB: predicated region body
PF: predicated region fallthrough
CT: control target
= control target key end

     0   :  { %9 = vsyncpa [#allocation4], 0  ;;  %s3565_s0 = inlined_call_operand.vmem [shape: bf16[1024,256], index: 0, kind: input, shape index: {}]   ;;  %s3566_s1 = inlined_call_operand.vmem [shape: bf16[256,128], index: 1, kind: input, shape index: {}]   ;;  %s3567_s2 = inlined_call_operand.vmem [shape: f32[1,128], index: 2, kind: input, shape index: {}]   ;;  %s3568_s3 = inlined_call_operand.vmem [shape: f32[1,128], index: 3, kind: input, shape index: {}]   ;;  %s3569_s4 = inlined_call_operand.hbm [shape: f32[1024,128], index: 4, kind: output, shape index: {}]  }
   0x1   :  { %11 = vsyncpa [#allocation4 + $0x1], 0  ;;  %s2827_s15 = smov 0   ;;  %s2829_s16 = smov 0  }
   0x2   :  { %s2831_s17 = smov 0   ;;  %s2833_s18 = smov 0  }
   0x3   :  { %s2835_s19 = smov 0   ;;  %s2837_s20 = smov 0  }
   0x4 LB: > { %s2157_s21 = sadd.s32 4294967295, %s2796_s20   ;;  %s2158_s22 = sadd.s32 4294967294, %s2796_s20   ;;  %s2796_s20 = sphi %s2837_s20, %s17_s20   ;;  %s2792_s19 = sphi %s2835_s19, %s3576_s19   ;;  %s2788_s18 = sphi %s2833_s18, %s3575_s18   ;;  %s2784_s17 = sphi %s2831_s17, %s3574_s17   ;;  %s2780_s16 = sphi %s2829_s16, %s3573_s16   ;;  %s2776_s15 = sphi %s2827_s15, %s3572_s15  }
   0x5   : > { %s36_s23 = sadd.s32 1, %s2792_s19  ;;  %s153_s24 = sadd.s32 1, %s2784_s17 }
   0x6   : > { %p38_p0 = scmp.ge.s32.totalorder %s36_s23, 2  ;;  %p163_p1 = scmp.ne.s32.totalorder %s2784_s17, %s2780_s16 }
   0x7   : > { %p164_p2 = scmp.eq.s32.totalorder %s2157_s21, 1  ;;  %p169_p3 = scmp.ne.s32.totalorder %s2780_s16, %s2776_s15 }
   0x8   : > { %s3578_s23 = smov (%p38_p0, %s36_s23), 0  ;;  %p170_p5 = scmp.eq.s32.totalorder %s2158_s22, 1 }
   0x9   : > { %p2867_p4 = por %p164_p2, %p163_p1  ;;  %s148_s26 = ssub.s32 %s2792_s19, %s3578_s23 }
   0xa   : > { %p2164_p6 = scmp.ge.s32.totalorder %s2796_s20, 1  ;;  %p151_p7 = scmp.eq.s32.totalorder %s148_s26, 0 }
   0xb   : > { %p2874_p8 = por %p170_p5, %p169_p3  ;;  %p227_p9 = scmp.lt.s32.totalorder %s2796_s20, 3 }
   0xc   : > { %s2880_s28 = scalar_select %p151_p7, %s2784_s17, %s153_s24  }
   0xd   : > { %p228_p10 = pnand %p2164_p6, %p227_p9 }
   0xe   : > { %v2348_v0 = vld [vmem:[%s3566_s1] sm:$0xff] (!%p228_p10)   ;;  %v2798_v1 = vmov (!%p228_p10), 0   ;;  %s2166_s5 = sshll.u32 (!%p228_p10), %s2788_s18, 6  ;;  %v2349_v2 = vld [vmem:[%s3566_s1 + $0x8] sm:$0xff] (!%p228_p10)   ;;  %v2350_v3 = vld [vmem:[%s3566_s1 + $0x10] sm:$0xff] (!%p228_p10)   ;;  %s2257_s30 = sshll.u32 (!%p228_p10), %s2788_s18, 13 }
   0xf   : > { %231 = sbr.rel (%p228_p10) target bundleno = 472 (0x1d8), region = 36  ;;  %945 = vmatprep.subr.bf16.mxu0 (!%p228_p10), %v2798_v1  ;;  %2258 = vmatprep.subr.bf16.mxu1 (!%p228_p10), %v2798_v1  ;;  %p274_p11 = scmp.lt.s32.totalorder (!%p228_p10), %s2166_s5, 127  ;;  %v2351_v4 = vld [vmem:[%s3566_s1 + $0x18] sm:$0xff] (!%p228_p10)   ;;  %v2352_v5 = vld [vmem:[%s3566_s1 + $0x20] sm:$0xff] (!%p228_p10)   ;;  %v2353_v7 = vld [vmem:[%s3566_s1 + $0x28] sm:$0xff] (!%p228_p10)  }
  0x10   : > { %946 = vmatpush1.bf16.msra.mxu0 (!%p228_p10), %v2348_v0  ;;  %2274 = vmatpush1.bf16.msra.mxu1 (!%p228_p10), %v2348_v0  ;;  %v2354_v9 = vld [vmem:[%s3566_s1 + $0x30] sm:$0xff] (!%p228_p10)   ;;  %v2355_v10 = vld [vmem:[%s3566_s1 + $0x38] sm:$0xff] (!%p228_p10)   ;;  %v2356_v11 = vld [vmem:[%s3566_s1 + $0x40] sm:$0xff] (!%p228_p10)   ;;  %s3510_s8 = scalar_lea.hbm (!%p228_p10), %s3569_s4, %s2257_s30  ;;  %s2799_s10 = smov (!%p228_p10), [#allocation3]  }
  0x11   : > { %947 = vmatprep.subr.bf16.mxu0 (!%p228_p10), %v2798_v1  ;;  %2259 = vmatprep.subr.bf16.mxu1 (!%p228_p10), %v2798_v1  ;;  %v2357_v12 = vld [vmem:[%s3566_s1 + $0x48] sm:$0xff] (!%p228_p10)   ;;  %v2358_v13 = vld [vmem:[%s3566_s1 + $0x50] sm:$0xff] (!%p228_p10)   ;;  %v2359_v14 = vld [vmem:[%s3566_s1 + $0x58] sm:$0xff] (!%p228_p10)   ;;  %s2722_s11 = sshll.u32 (!%p228_p10), %s2799_s10, 4  ;;  %s2723_s11 = int_to_ptr.vmem [resolvable:$false] %s2722_s11 }
  0x12   : > { %v2360_v15 = vld [vmem:[%s3566_s1 + $0x60] sm:$0xff] (!%p228_p10)   ;;  %v2361_v16 = vld [vmem:[%s3566_s1 + $0x68] sm:$0xff] (!%p228_p10)   ;;  %v2362_v17 = vld [vmem:[%s3566_s1 + $0x70] sm:$0xff] (!%p228_p10)  }
  0x13   : > { %v2363_v18 = vld [vmem:[%s3566_s1 + $0x78] sm:$0xff] (!%p228_p10)  }
  0x14   : > { %948 = vmatpush1.bf16.msra.mxu0 (!%p228_p10), %v2349_v2  ;;  %2275 = vmatpush1.bf16.msra.mxu1 (!%p228_p10), %v2349_v2 }
  0x15   : > { %949 = vmatprep.subr.bf16.mxu0 (!%p228_p10), %v2798_v1  ;;  %2260 = vmatprep.subr.bf16.mxu1 (!%p228_p10), %v2798_v1 }
  0x16   : > { %s3580_s5 = smov (!%p274_p11, %s2166_s5), 127 }
  0x17   : > { %s2256_s12 = sshll.u32 %s3580_s5, 3 }
  0x18   : > { %950 = vmatpush1.bf16.msra.mxu0 %v2350_v3  ;;  %2276 = vmatpush1.bf16.msra.mxu1 %v2350_v3  ;;  %s2909_s24 = scalar_lea.vmem %s3565_s0, %s2256_s12  ;;  %s2724_s12 = scalar_lea.vmem %s2723_s11, 16384 }
  0x19   : > { %951 = vmatprep.subr.bf16.mxu0 %v2798_v1  ;;  %2261 = vmatprep.subr.bf16.mxu1 %v2798_v1  ;;  %v2366_v6 = vld [vmem:[%s2909_s24 + $0x4] ss:$8 sps:$4 sm:$0xff]   ;;  %v2364_v19 = vld [vmem:[%s2909_s24] ss:$8 sps:$4 sm:$0xff]   ;;  %v2370_v21 = vld [vmem:[%s2909_s24 + $0x14] ss:$8 sps:$4 sm:$0xff]  }
  0x1a   : > { %v2369_v8 = vld [vmem:[%s2909_s24 + $0x104] ss:$8 sps:$4 sm:$0xff]   ;;  %977 = vmatprep.mubr.bf16.mxu0 %v2366_v6  ;;  %v2367_v20 = vld [vmem:[%s2909_s24 + $0x100] ss:$8 sps:$4 sm:$0xff]   ;;  %v2372_v22 = vld [vmem:[%s2909_s24 + $0x114] ss:$8 sps:$4 sm:$0xff]  }
  0x1b   : > { %1105 = vmatprep.mubr.bf16.mxu1 %v2369_v8  ;;  %v2374_v23 = vld [vmem:[%s2909_s24 + $0x10] ss:$8 sps:$4 sm:$0xff]   ;;  %v2376_v25 = vld [vmem:[%s2909_s24 + $0x24] ss:$8 sps:$4 sm:$0xff]   ;;  %v2380_v27 = vld [vmem:[%s2909_s24 + $0x20] ss:$8 sps:$4 sm:$0xff]  }
  0x1c   : > { %952 = vmatpush1.bf16.msra.mxu0 %v2351_v4  ;;  %2277 = vmatpush1.bf16.msra.mxu1 %v2351_v4  ;;  %v2375_v24 = vld [vmem:[%s2909_s24 + $0x110] ss:$8 sps:$4 sm:$0xff]   ;;  %v2378_v26 = vld [vmem:[%s2909_s24 + $0x124] ss:$8 sps:$4 sm:$0xff]   ;;  %v2381_v28 = vld [vmem:[%s2909_s24 + $0x120] ss:$8 sps:$4 sm:$0xff]  }
  0x1d   : > { %953 = vmatprep.subr.bf16.mxu0 %v2798_v1  ;;  %2262 = vmatprep.subr.bf16.mxu1 %v2798_v1  ;;  %v2382_v29 = vld [vmem:[%s2909_s24 + $0x34] ss:$8 sps:$4 sm:$0xff]   ;;  %v2386_v31 = vld [vmem:[%s2909_s24 + $0x30] ss:$8 sps:$4 sm:$0xff]   ;;  %v2388_v33 = vld [vmem:[%s2909_s24 + $0x44] ss:$8 sps:$4 sm:$0xff]  }
  0x1e   : > { %v2384_v30 = vld [vmem:[%s2909_s24 + $0x134] ss:$8 sps:$4 sm:$0xff]   ;;  %v2387_v32 = vld [vmem:[%s2909_s24 + $0x130] ss:$8 sps:$4 sm:$0xff]   ;;  %v2390_v34 = vld [vmem:[%s2909_s24 + $0x144] ss:$8 sps:$4 sm:$0xff]  }
  0x1f   : > { %v2392_v35 = vld [vmem:[%s2909_s24 + $0x40] ss:$8 sps:$4 sm:$0xff]   ;;  %v2394_v37 = vld [vmem:[%s2909_s24 + $0x54] ss:$8 sps:$4 sm:$0xff]   ;;  %v2398_v39 = vld [vmem:[%s2909_s24 + $0x50] ss:$8 sps:$4 sm:$0xff]  }
  0x20   : > { %954 = vmatpush1.bf16.msra.mxu0 %v2352_v5  ;;  %2278 = vmatpush1.bf16.msra.mxu1 %v2352_v5  ;;  %v2393_v36 = vld [vmem:[%s2909_s24 + $0x140] ss:$8 sps:$4 sm:$0xff]   ;;  %v2396_v38 = vld [vmem:[%s2909_s24 + $0x154] ss:$8 sps:$4 sm:$0xff]   ;;  %v2399_v40 = vld [vmem:[%s2909_s24 + $0x150] ss:$8 sps:$4 sm:$0xff]  }
  0x21   : > { %955 = vmatprep.subr.bf16.mxu0 %v2798_v1  ;;  %2263 = vmatprep.subr.bf16.mxu1 %v2798_v1  ;;  %v2400_v41 = vld [vmem:[%s2909_s24 + $0x64] ss:$8 sps:$4 sm:$0xff]   ;;  %v2404_v43 = vld [vmem:[%s2909_s24 + $0x60] ss:$8 sps:$4 sm:$0xff]   ;;  %v2406_v45 = vld [vmem:[%s2909_s24 + $0x74] ss:$8 sps:$4 sm:$0xff]  }
  0x22   : > { %v2402_v42 = vld [vmem:[%s2909_s24 + $0x164] ss:$8 sps:$4 sm:$0xff]   ;;  %v2405_v44 = vld [vmem:[%s2909_s24 + $0x160] ss:$8 sps:$4 sm:$0xff]   ;;  %v2408_v46 = vld [vmem:[%s2909_s24 + $0x174] ss:$8 sps:$4 sm:$0xff]  }
  0x23   : > { %v2410_v47 = vld [vmem:[%s2909_s24 + $0x70] ss:$8 sps:$4 sm:$0xff]   ;;  %v2412_v49 = vld [vmem:[%s2909_s24 + $0x84] ss:$8 sps:$4 sm:$0xff]   ;;  %v2416_v51 = vld [vmem:[%s2909_s24 + $0x80] ss:$8 sps:$4 sm:$0xff]  }
  0x24   : > { %956 = vmatpush1.bf16.msra.mxu0 %v2353_v7  ;;  %2279 = vmatpush1.bf16.msra.mxu1 %v2353_v7  ;;  %v2411_v48 = vld [vmem:[%s2909_s24 + $0x170] ss:$8 sps:$4 sm:$0xff]   ;;  %v2414_v50 = vld [vmem:[%s2909_s24 + $0x184] ss:$8 sps:$4 sm:$0xff]   ;;  %v2417_v52 = vld [vmem:[%s2909_s24 + $0x180] ss:$8 sps:$4 sm:$0xff]  }
  0x25   : > { %957 = vmatprep.subr.bf16.mxu0 %v2798_v1  ;;  %2264 = vmatprep.subr.bf16.mxu1 %v2798_v1  ;;  %v2418_v53 = vld [vmem:[%s2909_s24 + $0x94] ss:$8 sps:$4 sm:$0xff]   ;;  %v2422_v55 = vld [vmem:[%s2909_s24 + $0x90] ss:$8 sps:$4 sm:$0xff]   ;;  %v2424_v57 = vld [vmem:[%s2909_s24 + $0xa4] ss:$8 sps:$4 sm:$0xff]  }
  0x26   : > { %v2420_v54 = vld [vmem:[%s2909_s24 + $0x194] ss:$8 sps:$4 sm:$0xff]   ;;  %v2423_v56 = vld [vmem:[%s2909_s24 + $0x190] ss:$8 sps:$4 sm:$0xff]   ;;  %v2426_v58 = vld [vmem:[%s2909_s24 + $0x1a4] ss:$8 sps:$4 sm:$0xff]  }
  0x27   : > { %v2428_v59 = vld [vmem:[%s2909_s24 + $0xa0] ss:$8 sps:$4 sm:$0xff]   ;;  %v2430_v61 = vld [vmem:[%s2909_s24 + $0xb4] ss:$8 sps:$4 sm:$0xff]   ;;  %v2434_v63 = vld [vmem:[%s2909_s24 + $0xb0] ss:$8 sps:$4 sm:$0xff]  }
  0x28   : > { %958 = vmatpush1.bf16.msra.mxu0 %v2354_v9  ;;  %2280 = vmatpush1.bf16.msra.mxu1 %v2354_v9  ;;  %v2429_v60 = vld [vmem:[%s2909_s24 + $0x1a0] ss:$8 sps:$4 sm:$0xff]   ;;  %v2432_v62 = vld [vmem:[%s2909_s24 + $0x1b4] ss:$8 sps:$4 sm:$0xff]   ;;  %v2435_v0 = vld [vmem:[%s2909_s24 + $0x1b0] ss:$8 sps:$4 sm:$0xff]  }
  0x29   : > { %959 = vmatprep.subr.bf16.mxu0 %v2798_v1  ;;  %2265 = vmatprep.subr.bf16.mxu1 %v2798_v1  ;;  %v2438_v2 = vld [vmem:[%s2909_s24 + $0x1c4] ss:$8 sps:$4 sm:$0xff]   ;;  %v2440_v3 = vld [vmem:[%s2909_s24 + $0xc0] ss:$8 sps:$4 sm:$0xff]   ;;  %v2442_v5 = vld [vmem:[%s2909_s24 + $0xd4] ss:$8 sps:$4 sm:$0xff]  }
  0x2a   : > { %v2441_v4 = vld [vmem:[%s2909_s24 + $0x1c0] ss:$8 sps:$4 sm:$0xff]   ;;  %v2444_v6 = vld [vmem:[%s2909_s24 + $0x1d4] ss:$8 sps:$4 sm:$0xff]   ;;  %v2446_v7 = vld [vmem:[%s2909_s24 + $0xd0] ss:$8 sps:$4 sm:$0xff]  }
  0x2b   : > { %v2447_v8 = vld [vmem:[%s2909_s24 + $0x1d0] ss:$8 sps:$4 sm:$0xff]   ;;  %v2448_v9 = vld [vmem:[%s2909_s24 + $0xe4] ss:$8 sps:$4 sm:$0xff]  }
  0x2c   : > { %960 = vmatpush1.bf16.msra.mxu0 %v2355_v10  ;;  %2281 = vmatpush1.bf16.msra.mxu1 %v2355_v10  ;;  %v2450_v10 = vld [vmem:[%s2909_s24 + $0x1e4] ss:$8 sps:$4 sm:$0xff]  }
  0x2d   : > { %961 = vmatprep.subr.bf16.mxu0 %v2798_v1  ;;  %2266 = vmatprep.subr.bf16.mxu1 %v2798_v1 }
  0x30   : > { %962 = vmatpush1.bf16.msra.mxu0 %v2356_v11  ;;  %2282 = vmatpush1.bf16.msra.mxu1 %v2356_v11  ;;  %v2452_v11 = vld [vmem:[%s2909_s24 + $0xe0] ss:$8 sps:$4 sm:$0xff]  }
  0x31   : > { %963 = vmatprep.subr.bf16.mxu0 %v2798_v1  ;;  %2267 = vmatprep.subr.bf16.mxu1 %v2798_v1 }
  0x34   : > { %964 = vmatpush1.bf16.msra.mxu0 %v2357_v12  ;;  %2283 = vmatpush1.bf16.msra.mxu1 %v2357_v12  ;;  %v2453_v12 = vld [vmem:[%s2909_s24 + $0x1e0] ss:$8 sps:$4 sm:$0xff]  }
  0x35   : > { %965 = vmatprep.subr.bf16.mxu0 %v2798_v1  ;;  %2268 = vmatprep.subr.bf16.mxu1 %v2798_v1 }
  0x38   : > { %966 = vmatpush1.bf16.msra.mxu0 %v2358_v13  ;;  %2284 = vmatpush1.bf16.msra.mxu1 %v2358_v13  ;;  %v2454_v13 = vld [vmem:[%s2909_s24 + $0xf4] ss:$8 sps:$4 sm:$0xff]  }
  0x39   : > { %967 = vmatprep.subr.bf16.mxu0 %v2798_v1  ;;  %2269 = vmatprep.subr.bf16.mxu1 %v2798_v1 }
  0x3c   : > { %968 = vmatpush1.bf16.msra.mxu0 %v2359_v14  ;;  %2285 = vmatpush1.bf16.msra.mxu1 %v2359_v14  ;;  %v2456_v14 = vld [vmem:[%s2909_s24 + $0x1f4] ss:$8 sps:$4 sm:$0xff]  }
  0x3d   : > { %969 = vmatprep.subr.bf16.mxu0 %v2798_v1  ;;  %2270 = vmatprep.subr.bf16.mxu1 %v2798_v1 }
  0x40   : > { %970 = vmatpush1.bf16.msra.mxu0 %v2360_v15  ;;  %2286 = vmatpush1.bf16.msra.mxu1 %v2360_v15  ;;  %v2458_v15 = vld [vmem:[%s2909_s24 + $0xf0] ss:$8 sps:$4 sm:$0xff]  }
  0x41   : > { %971 = vmatprep.subr.bf16.mxu0 %v2798_v1  ;;  %2271 = vmatprep.subr.bf16.mxu1 %v2798_v1 }
  0x44   : > { %972 = vmatpush1.bf16.msra.mxu0 %v2361_v16  ;;  %2287 = vmatpush1.bf16.msra.mxu1 %v2361_v16  ;;  %v2459_v16 = vld [vmem:[%s2909_s24 + $0x1f0] ss:$8 sps:$4 sm:$0xff]  }
  0x45   : > { %973 = vmatprep.subr.bf16.mxu0 %v2798_v1  ;;  %2272 = vmatprep.subr.bf16.mxu1 %v2798_v1 }
  0x48   : > { %974 = vmatpush1.bf16.msra.mxu0 %v2362_v17  ;;  %2288 = vmatpush1.bf16.msra.mxu1 %v2362_v17  ;;  %v3035_v17 = vld [vmem:[%s3567_s2] ss:$0 sm:$0xff] }
  0x49   : > { %975 = vmatprep.subr.bf16.mxu0 %v2798_v1  ;;  %2273 = vmatprep.subr.bf16.mxu1 %v2798_v1  ;;  %v2436_v1 = vld [vmem:[%s2909_s24 + $0xc4] ss:$8 sps:$4 sm:$0xff]   ;;  %s269_s24 = sand.u32 1, %s2780_s16  }
  0x4a   : > { %s3115_s13 = sshll.u32 %s269_s24, 9  ;;  %s3519_s18 = scalar_lea.sflag [#allocation4], %s269_s24 }
  0x4b   : > { %s3132_s14 = scalar_lea.vmem [#allocation3], %s3115_s13 }
  0x4c   : > { %976 = vmatpush1.bf16.msra.mxu0 %v2363_v18  ;;  %2289 = vmatpush1.bf16.msra.mxu1 %v2363_v18  ;;  %s2034_s5 = sshll.u32 %s3132_s14, 4  ;;  %s3512_s5 = int_to_ptr.vmem [resolvable:$true] %s2034_s5 }
  0x4d   : > { %s2718_s9 = scalar_lea.vmem %s3512_s5, 8192  ;;  %p2725_p1 = scmp.lt.s32.totalorder %s3512_s5, %s2723_s11 }
  0x4e   : > { %p2719_p12 = scmp.ne.s32.totalorder %s3512_s5, %s2718_s9  ;;  %p2726_p2 = scmp.lt.s32.totalorder %s2724_s12, %s2718_s9 }
  0x4f   : > { %978 = vmatmul.mubr.bf16.vlgmr.msra.gmra.mrb[0].mxu0 %v2364_v19  ;;  %1106 = vmatmul.mubr.bf16.vlgmr.msra.gmra.mrb[0].mxu1 %v2367_v20  ;;  %v3040_v19 = vld [vmem:[%s3568_s3] ss:$0 sm:$0xff] }
  0x50   : > { %985 = vmatprep.mubr.bf16.mxu0 %v2370_v21  ;;  %1113 = vmatprep.mubr.bf16.mxu1 %v2372_v22  ;;  %p2720_p13 = pnand %p2719_p12, %p2867_p4  ;;  %p2727_p3 = por %p2726_p2, %p2725_p1 }
  0x52   : > { %p2721_p0 = pneg %p2720_p13 }
  0x54   : > { %p2728_p5 = pnand %p2727_p3, %p2721_p0 }
  0x57   : > { %986 = vmatmul.mubr.bf16.gmra.mrb[4].mxu0 %v2374_v23  ;;  %1114 = vmatmul.mubr.bf16.gmra.mrb[4].mxu1 %v2375_v24 }
  0x58   : > { %993 = vmatprep.mubr.bf16.mxu0 %v2376_v25  ;;  %1121 = vmatprep.mubr.bf16.mxu1 %v2378_v26 }
  0x5f   : > { %994 = vmatmul.mubr.bf16.gmra.mrb[8].mxu0 %v2380_v27  ;;  %1122 = vmatmul.mubr.bf16.gmra.mrb[8].mxu1 %v2381_v28 }
  0x60   : > { %1001 = vmatprep.mubr.bf16.mxu0 %v2382_v29  ;;  %1129 = vmatprep.mubr.bf16.mxu1 %v2384_v30 }
  0x67   : > { %1002 = vmatmul.mubr.bf16.gmra.mrb[12].mxu0 %v2386_v31  ;;  %1130 = vmatmul.mubr.bf16.gmra.mrb[12].mxu1 %v2387_v32 }
  0x68   : > { %1009 = vmatprep.mubr.bf16.mxu0 %v2388_v33  ;;  %1137 = vmatprep.mubr.bf16.mxu1 %v2390_v34 }
  0x6f   : > { %1010 = vmatmul.mubr.bf16.gmra.mrb[16].mxu0 %v2392_v35  ;;  %1138 = vmatmul.mubr.bf16.gmra.mrb[16].mxu1 %v2393_v36 }
  0x70   : > { %1017 = vmatprep.mubr.bf16.mxu0 %v2394_v37  ;;  %1145 = vmatprep.mubr.bf16.mxu1 %v2396_v38 }
  0x77   : > { %1018 = vmatmul.mubr.bf16.gmra.mrb[20].mxu0 %v2398_v39  ;;  %1146 = vmatmul.mubr.bf16.gmra.mrb[20].mxu1 %v2399_v40 }
  0x78   : > { %1025 = vmatprep.mubr.bf16.mxu0 %v2400_v41  ;;  %1153 = vmatprep.mubr.bf16.mxu1 %v2402_v42 }
  0x7f   : > { %1026 = vmatmul.mubr.bf16.gmra.mrb[24].mxu0 %v2404_v43  ;;  %1154 = vmatmul.mubr.bf16.gmra.mrb[24].mxu1 %v2405_v44 }
  0x80   : > { %1033 = vmatprep.mubr.bf16.mxu0 %v2406_v45  ;;  %1161 = vmatprep.mubr.bf16.mxu1 %v2408_v46 }
  0x87   : > { %1034 = vmatmul.mubr.bf16.gmra.mrb[28].mxu0 %v2410_v47  ;;  %1162 = vmatmul.mubr.bf16.gmra.mrb[28].mxu1 %v2411_v48 }
  0x88   : > { %1041 = vmatprep.mubr.bf16.mxu0 %v2412_v49  ;;  %1169 = vmatprep.mubr.bf16.mxu1 %v2414_v50 }
  0x8f   : > { %1042 = vmatmul.mubr.bf16.gmra.mrb[32].mxu0 %v2416_v51  ;;  %1170 = vmatmul.mubr.bf16.gmra.mrb[32].mxu1 %v2417_v52 }
  0x90   : > { %1049 = vmatprep.mubr.bf16.mxu0 %v2418_v53  ;;  %1177 = vmatprep.mubr.bf16.mxu1 %v2420_v54 }
  0x97   : > { %1050 = vmatmul.mubr.bf16.gmra.mrb[36].mxu0 %v2422_v55  ;;  %1178 = vmatmul.mubr.bf16.gmra.mrb[36].mxu1 %v2423_v56 }
  0x98   : > { %1057 = vmatprep.mubr.bf16.mxu0 %v2424_v57  ;;  %1185 = vmatprep.mubr.bf16.mxu1 %v2426_v58 }
  0x9f   : > { %1058 = vmatmul.mubr.bf16.gmra.mrb[40].mxu0 %v2428_v59  ;;  %1186 = vmatmul.mubr.bf16.gmra.mrb[40].mxu1 %v2429_v60 }
  0xa0   : > { %1065 = vmatprep.mubr.bf16.mxu0 %v2430_v61  ;;  %1193 = vmatprep.mubr.bf16.mxu1 %v2432_v62 }
  0xa7   : > { %1066 = vmatmul.mubr.bf16.gmra.mrb[44].mxu0 %v2434_v63  ;;  %1194 = vmatmul.mubr.bf16.gmra.mrb[44].mxu1 %v2435_v0 }
  0xa8   : > { %1073 = vmatprep.mubr.bf16.mxu0 %v2436_v1  ;;  %1201 = vmatprep.mubr.bf16.mxu1 %v2438_v2 }
  0xaf   : > { %1074 = vmatmul.mubr.bf16.gmra.mrb[48].mxu0 %v2440_v3  ;;  %1202 = vmatmul.mubr.bf16.gmra.mrb[48].mxu1 %v2441_v4 }
  0xb0   : > { %1081 = vmatprep.mubr.bf16.mxu0 %v2442_v5  ;;  %1209 = vmatprep.mubr.bf16.mxu1 %v2444_v6 }
  0xb7   : > { %1082 = vmatmul.mubr.bf16.gmra.mrb[52].mxu0 %v2446_v7  ;;  %1210 = vmatmul.mubr.bf16.gmra.mrb[52].mxu1 %v2447_v8 }
  0xb8   : > { %1089 = vmatprep.mubr.bf16.mxu0 %v2448_v9  ;;  %1217 = vmatprep.mubr.bf16.mxu1 %v2450_v10 }
  0xbf   : > { %1090 = vmatmul.mubr.bf16.gmra.mrb[56].mxu0 %v2452_v11  ;;  %1218 = vmatmul.mubr.bf16.gmra.mrb[56].mxu1 %v2453_v12 }
  0xc0   : > { %1097 = vmatprep.mubr.bf16.mxu0 %v2454_v13  ;;  %1225 = vmatprep.mubr.bf16.mxu1 %v2456_v14 }
  0xc7   : > { %1098 = vmatmul.mubr.bf16.gmra.mrb[60].mxu0 %v2458_v15  ;;  %1226 = vmatmul.mubr.bf16.gmra.mrb[60].mxu1 %v2459_v16 }
 0x122   : > { %v979_v18 = vpop.f32.mrb[0].mxu0  ;;  %v1107_v20 = vpop.f32.mrb[0].mxu1 }
 0x123   : > { %v1436_v21 = vmul.f32 %v3035_v17, %v979_v18  ;;  %v1468_v22 = vmul.f32 %v3035_v17, %v1107_v20  ;;  %v981_v23 = vpop.f32.mrb[1].mxu0  ;;  %v1109_v24 = vpop.f32.mrb[1].mxu1 }
 0x124   : > { %v982_v25 = vpop.f32.mrb[2].mxu0  ;;  %v1110_v26 = vpop.f32.mrb[2].mxu1 }
 0x125   : > { %v3045_v27 = vadd.f32 %v3040_v19, %v1436_v21  ;;  %v3048_v28 = vadd.f32 %v3040_v19, %v1468_v22  ;;  %v1437_v29 = vmul.f32 %v3035_v17, %v982_v25  ;;  %v1469_v30 = vmul.f32 %v3035_v17, %v1110_v26  ;;  %v984_v31 = vpop.f32.mrb[3].mxu0  ;;  %v1112_v32 = vpop.f32.mrb[3].mxu1 }
 0x127   : > { %v1571_v33 = vsub.f32 0.0, %v3045_v27  ;;  %v1603_v34 = vsub.f32 0.0, %v3048_v28  ;;  %v3055_v35 = vadd.f32 %v3040_v19, %v1437_v29  ;;  %v3058_v36 = vadd.f32 %v3040_v19, %v1469_v30 }
 0x129   : > { %v1635_v37 = vmul.f32 1.442695, %v1571_v33  ;;  %v1699_v38 = vmul.f32 1.442695, %v1603_v34  ;;  %v1572_v39 = vsub.f32 0.0, %v3055_v35  ;;  %v1604_v40 = vsub.f32 0.0, %v3058_v36 }
 0x12a   : > { %v987_v41 = vpop.f32.mrb[4].mxu0  ;;  %v1115_v42 = vpop.f32.mrb[4].mxu1 }
 0x12b   : > { %2460 = vpow2.f32 %v1635_v37  ;;  %v1637_v43 = vmul.f32 1.442695, %v1572_v39  ;;  %v1701_v44 = vmul.f32 1.442695, %v1604_v40  ;;  %v1438_v45 = vmul.f32 %v3035_v17, %v987_v41  ;;  %v989_v46 = vpop.f32.mrb[5].mxu0  ;;  %v1117_v47 = vpop.f32.mrb[5].mxu1 }
 0x12c   : > { %2462 = vpow2.f32 %v1699_v38  ;;  %v1470_v48 = vmul.f32 %v3035_v17, %v1115_v42  ;;  %v990_v49 = vpop.f32.mrb[6].mxu0  ;;  %v1118_v50 = vpop.f32.mrb[6].mxu1 }
 0x12d   : > { %2464 = vpow2.f32 %v1637_v43  ;;  %v3065_v51 = vadd.f32 %v3040_v19, %v1438_v45  ;;  %v1439_v52 = vmul.f32 %v3035_v17, %v990_v49  ;;  %v1471_v53 = vmul.f32 %v3035_v17, %v1118_v50  ;;  %v992_v54 = vpop.f32.mrb[7].mxu0  ;;  %v1120_v55 = vpop.f32.mrb[7].mxu1 }
 0x12e   : > { %2466 = vpow2.f32 %v1701_v44  ;;  %v3070_v56 = vadd.f32 %v3040_v19, %v1470_v48 }
 0x12f   : > { %v1573_v57 = vsub.f32 0.0, %v3065_v51  ;;  %v3074_v58 = vadd.f32 %v3040_v19, %v1439_v52  ;;  %v3077_v59 = vadd.f32 %v3040_v19, %v1471_v53 }
 0x130   : > { %v1605_v60 = vsub.f32 0.0, %v3070_v56 }
 0x131   : > { %v1639_v61 = vmul.f32 1.442695, %v1573_v57  ;;  %v1574_v62 = vsub.f32 0.0, %v3074_v58  ;;  %v1606_v63 = vsub.f32 0.0, %v3077_v59 }
 0x132   : > { %v1703_v0 = vmul.f32 1.442695, %v1605_v60  ;;  %v995_v1 = vpop.f32.mrb[8].mxu0  ;;  %v1123_v2 = vpop.f32.mrb[8].mxu1 }
 0x133   : > { %2468 = vpow2.f32 %v1639_v61  ;;  %v1641_v3 = vmul.f32 1.442695, %v1574_v62  ;;  %v1705_v4 = vmul.f32 1.442695, %v1606_v63  ;;  %v1440_v5 = vmul.f32 %v3035_v17, %v995_v1  ;;  %v997_v6 = vpop.f32.mrb[9].mxu0  ;;  %v1125_v7 = vpop.f32.mrb[9].mxu1 }
 0x134   : > { %2470 = vpow2.f32 %v1703_v0  ;;  %v1472_v8 = vmul.f32 %v3035_v17, %v1123_v2  ;;  %v998_v9 = vpop.f32.mrb[10].mxu0  ;;  %v1126_v10 = vpop.f32.mrb[10].mxu1 }
 0x135   : > { %v2461_v11 = vpop.eup %2460  ;;  %2472 = vpow2.f32 %v1641_v3  ;;  %v3085_v12 = vadd.f32 %v3040_v19, %v1440_v5  ;;  %v1441_v13 = vmul.f32 %v3035_v17, %v998_v9  ;;  %v1473_v14 = vmul.f32 %v3035_v17, %v1126_v10  ;;  %v1000_v15 = vpop.f32.mrb[11].mxu0 }
 0x136   : > { %v1128_v16 = vpop.f32.mrb[11].mxu1  ;;  %v2463_v18 = vpop.eup %2462  ;;  %v1763_v20 = vadd.f32 1.0, %v2461_v11  ;;  %2474 = vpow2.f32 %v1705_v4  ;;  %v3090_v21 = vadd.f32 %v3040_v19, %v1472_v8 }
 0x137   : > { %v2465_v22 = vpop.eup %2464  ;;  %v1795_v23 = vadd.f32 1.0, %v2463_v18  ;;  %v1575_v24 = vsub.f32 0.0, %v3085_v12  ;;  %v3094_v25 = vadd.f32 %v3040_v19, %v1441_v13  ;;  %v3097_v26 = vadd.f32 %v3040_v19, %v1473_v14 }
 0x138   : > { %v2467_v29 = vpop.eup %2466  ;;  %2476 = vrcp.f32 %v1763_v20  ;;  %v1764_v30 = vadd.f32 1.0, %v2465_v22  ;;  %v1607_v31 = vsub.f32 0.0, %v3090_v21 }
 0x139   : > { %2478 = vrcp.f32 %v1795_v23  ;;  %v1796_v32 = vadd.f32 1.0, %v2467_v29  ;;  %v1643_v33 = vmul.f32 1.442695, %v1575_v24  ;;  %v1576_v34 = vsub.f32 0.0, %v3094_v25 }
 0x13a   : > { %2480 = vrcp.f32 %v1764_v30  ;;  %v1707_v37 = vmul.f32 1.442695, %v1607_v31  ;;  %v1608_v38 = vsub.f32 0.0, %v3097_v26  ;;  %v1003_v39 = vpop.f32.mrb[12].mxu0  ;;  %v1131_v40 = vpop.f32.mrb[12].mxu1 }
 0x13b   : > { %2482 = vrcp.f32 %v1796_v32  ;;  %v1645_v41 = vmul.f32 1.442695, %v1576_v34  ;;  %v1442_v42 = vmul.f32 %v3035_v17, %v1003_v39  ;;  %v1474_v43 = vmul.f32 %v3035_v17, %v1131_v40  ;;  %v1005_v44 = vpop.f32.mrb[13].mxu0  ;;  %v1133_v45 = vpop.f32.mrb[13].mxu1 }
 0x13c   : > { %2484 = vpow2.f32 %v1643_v33  ;;  %v1709_v46 = vmul.f32 1.442695, %v1608_v38  ;;  %v1006_v47 = vpop.f32.mrb[14].mxu0  ;;  %v1134_v48 = vpop.f32.mrb[14].mxu1 }
 0x13d   : > { %v2469_v49 = vpop.eup %2468  ;;  %2486 = vpow2.f32 %v1707_v37  ;;  %v3106_v50 = vadd.f32 %v3040_v19, %v1442_v42  ;;  %v3109_v52 = vadd.f32 %v3040_v19, %v1474_v43  ;;  %v1443_v53 = vmul.f32 %v3035_v17, %v1006_v47  ;;  %v1008_v54 = vpop.f32.mrb[15].mxu0 }
 0x13e   : > { %v1136_v55 = vpop.f32.mrb[15].mxu1  ;;  %v2471_v57 = vpop.eup %2470  ;;  %v1765_v60 = vadd.f32 1.0, %v2469_v49  ;;  %2488 = vpow2.f32 %v1645_v41  ;;  %v1475_v61 = vmul.f32 %v3035_v17, %v1134_v48 }
 0x13f   : > { %v2473_v62 = vpop.eup %2472  ;;  %v1797_v63 = vadd.f32 1.0, %v2471_v57  ;;  %2490 = vpow2.f32 %v1709_v46  ;;  %v1577_v0 = vsub.f32 0.0, %v3106_v50  ;;  %v1609_v1 = vsub.f32 0.0, %v3109_v52 }
 0x140   : > { %v2475_v2 = vpop.eup %2474  ;;  %2492 = vrcp.f32 %v1765_v60  ;;  %v1766_v3 = vadd.f32 1.0, %v2473_v62  ;;  %v3120_v4 = vadd.f32 %v3040_v19, %v1443_v53  ;;  %v3123_v5 = vadd.f32 %v3040_v19, %v1475_v61 }
 0x141   : > { %2494 = vrcp.f32 %v1797_v63  ;;  %v1798_v6 = vadd.f32 1.0, %v2475_v2  ;;  %v1647_v7 = vmul.f32 1.442695, %v1577_v0  ;;  %v1711_v8 = vmul.f32 1.442695, %v1609_v1 }
 0x142   : > { %v2477_v9 = vpop.eup %2476  ;;  %2496 = vrcp.f32 %v1766_v3  ;;  %v1578_v10 = vsub.f32 0.0, %v3120_v4  ;;  %v1610_v11 = vsub.f32 0.0, %v3123_v5  ;;  %v1011_v13 = vpop.f32.mrb[16].mxu0 }
 0x143   : > { %v1139_v14 = vpop.f32.mrb[16].mxu1  ;;  %v2479_v15 = vpop.eup %2478  ;;  %v1891_v16 = vmul.f32 %v2477_v9, %v3045_v27  ;;  %2498 = vrcp.f32 %v1798_v6  ;;  %v1444_v18 = vmul.f32 %v3035_v17, %v1011_v13 }
 0x144   : > { %v1476_v20 = vmul.f32 %v3035_v17, %v1139_v14  ;;  %v1013_v22 = vpop.f32.mrb[17].mxu0  ;;  %v1141_v23 = vpop.f32.mrb[17].mxu1  ;;  %v1923_v29 = vmul.f32 %v2479_v15, %v3048_v28  ;;  %2500 = vpow2.f32 %v1647_v7  ;;  %v1649_v30 = vmul.f32 1.442695, %v1578_v10 }
 0x145   : > { %v2481_v24 = vpop.eup %2480  ;;  %v1713_v31 = vmul.f32 1.442695, %v1610_v11  ;;  %v1014_v32 = vpop.f32.mrb[18].mxu0  ;;  %1955 = vst [vmem:[%s3132_s14] sm:$0xff] %v1891_v16  ;;  %2502 = vpow2.f32 %v1711_v8  ;;  %v3137_v37 = vadd.f32 %v3040_v19, %v1444_v18 }
 0x146   : > { %v1142_v33 = vpop.f32.mrb[18].mxu1  ;;  %v2483_v34 = vpop.eup %2482  ;;  %v1892_v27 = vmul.f32 %v2481_v24, %v3055_v35  ;;  %v3140_v28 = vadd.f32 %v3040_v19, %v1476_v20  ;;  %1987 = vst [vmem:[%s3132_s14 + $0x100] sm:$0xff] %v1923_v29  ;;  %2504 = vpow2.f32 %v1649_v30  ;;  %v1445_v42 = vmul.f32 %v3035_v17, %v1014_v32 }
 0x147   : > { %v1016_v38 = vpop.f32.mrb[19].mxu0  ;;  %v1144_v39 = vpop.f32.mrb[19].mxu1  ;;  %v1924_v41 = vmul.f32 %v2483_v34, %v3058_v36  ;;  %v1477_v43 = vmul.f32 %v3035_v17, %v1142_v33  ;;  %2506 = vpow2.f32 %v1713_v31  ;;  %v1579_v45 = vsub.f32 0.0, %v3137_v37 }
 0x148   : > { %v2485_v40 = vpop.eup %2484  ;;  %1956 = vst [vmem:[%s3132_s14 + $0x8] sm:$0xff] %v1892_v27  ;;  %v1611_v46 = vsub.f32 0.0, %v3140_v28  ;;  %v3151_v49 = vadd.f32 %v3040_v19, %v1445_v42 }
 0x149   : > { %v2487_v35 = vpop.eup %2486  ;;  %v1767_v44 = vadd.f32 1.0, %v2485_v40  ;;  %1988 = vst [vmem:[%s3132_s14 + $0x108] sm:$0xff] %v1924_v41  ;;  %v3154_v36 = vadd.f32 %v3040_v19, %v1477_v43  ;;  %v1651_v55 = vmul.f32 1.442695, %v1579_v45 }
 0x14a   : > { %v2489_v47 = vpop.eup %2488  ;;  %v1799_v48 = vadd.f32 1.0, %v2487_v35  ;;  %v1715_v57 = vmul.f32 1.442695, %v1611_v46  ;;  %v1580_v62 = vsub.f32 0.0, %v3151_v49  ;;  %v1019_v0 = vpop.f32.mrb[20].mxu0 }
 0x14b   : > { %v2491_v53 = vpop.eup %2490  ;;  %2508 = vrcp.f32 %v1767_v44  ;;  %v1768_v54 = vadd.f32 1.0, %v2489_v47  ;;  %v1612_v63 = vsub.f32 0.0, %v3154_v36  ;;  %v1147_v1 = vpop.f32.mrb[20].mxu1  ;;  %v1446_v6 = vmul.f32 %v3035_v17, %v1019_v0 }
 0x14c   : > { %v2493_v60 = vpop.eup %2492  ;;  %2510 = vrcp.f32 %v1799_v48  ;;  %v1800_v61 = vadd.f32 1.0, %v2491_v53  ;;  %v1478_v7 = vmul.f32 %v3035_v17, %v1147_v1  ;;  %v1021_v8 = vpop.f32.mrb[21].mxu0  ;;  %v1653_v13 = vmul.f32 1.442695, %v1580_v62 }
 0x14d   : > { %v2495_v2 = vpop.eup %2494  ;;  %v1893_v3 = vmul.f32 %v2493_v60, %v3065_v51  ;;  %2512 = vrcp.f32 %v1768_v54  ;;  %v1149_v9 = vpop.f32.mrb[21].mxu1  ;;  %v1717_v14 = vmul.f32 1.442695, %v1612_v63  ;;  %v3165_v20 = vadd.f32 %v3040_v19, %v1446_v6 }
 0x14e   : > { %v2497_v10 = vpop.eup %2496  ;;  %v1925_v11 = vmul.f32 %v2495_v2, %v3070_v56  ;;  %2514 = vrcp.f32 %v1800_v61  ;;  %v1022_v15 = vpop.f32.mrb[22].mxu0  ;;  %v3168_v22 = vadd.f32 %v3040_v19, %v1478_v7 }
 0x14f   : > { %v1150_v16 = vpop.f32.mrb[22].mxu1  ;;  %v2499_v18 = vpop.eup %2498  ;;  %1957 = vst [vmem:[%s3132_s14 + $0x10] sm:$0xff] %v1893_v3  ;;  %v1894_v51 = vmul.f32 %v2497_v10, %v3074_v58  ;;  %2516 = vpow2.f32 %v1651_v55  ;;  %v1447_v30 = vmul.f32 %v3035_v17, %v1022_v15  ;;  %v1581_v33 = vsub.f32 0.0, %v3165_v20 }
 0x150   : > { %v1024_v23 = vpop.f32.mrb[23].mxu0  ;;  %v1152_v56 = vpop.f32.mrb[23].mxu1  ;;  %1989 = vst [vmem:[%s3132_s14 + $0x110] sm:$0xff] %v1925_v11  ;;  %v1926_v29 = vmul.f32 %v2499_v18, %v3077_v59  ;;  %2518 = vpow2.f32 %v1715_v57  ;;  %v1479_v31 = vmul.f32 %v3035_v17, %v1150_v16  ;;  %v1613_v34 = vsub.f32 0.0, %v3168_v22 }
 0x151   : > { %v2501_v24 = vpop.eup %2500  ;;  %1958 = vst [vmem:[%s3132_s14 + $0x18] sm:$0xff] %v1894_v51  ;;  %2520 = vpow2.f32 %v1653_v13  ;;  %v3179_v39 = vadd.f32 %v3040_v19, %v1447_v30  ;;  %v1655_v42 = vmul.f32 1.442695, %v1581_v33 }
 0x152   : > { %v2503_v58 = vpop.eup %2502  ;;  %v1769_v32 = vadd.f32 1.0, %v2501_v24  ;;  %1990 = vst [vmem:[%s3132_s14 + $0x118] sm:$0xff] %v1926_v29  ;;  %2522 = vpow2.f32 %v1717_v14  ;;  %v3182_v59 = vadd.f32 %v3040_v19, %v1479_v31  ;;  %v1719_v43 = vmul.f32 1.442695, %v1613_v34  ;;  %v1027_v46 = vpop.f32.mrb[24].mxu0 }
 0x153   : > { %v2505_v27 = vpop.eup %2504  ;;  %v1801_v38 = vadd.f32 1.0, %v2503_v58  ;;  %v1582_v44 = vsub.f32 0.0, %v3179_v39  ;;  %v1155_v47 = vpop.f32.mrb[24].mxu1  ;;  %v1448_v53 = vmul.f32 %v3035_v17, %v1027_v46 }
 0x154   : > { %v2507_v40 = vpop.eup %2506  ;;  %2524 = vrcp.f32 %v1769_v32  ;;  %v1770_v41 = vadd.f32 1.0, %v2505_v27  ;;  %v1614_v45 = vsub.f32 0.0, %v3182_v59  ;;  %v1480_v54 = vmul.f32 %v3035_v17, %v1155_v47  ;;  %v1029_v55 = vpop.f32.mrb[25].mxu0 }
 0x155   : > { %2526 = vrcp.f32 %v1801_v38  ;;  %v1802_v35 = vadd.f32 1.0, %v2507_v40  ;;  %v2509_v48 = vpop.eup %2508  ;;  %v1157_v57 = vpop.f32.mrb[25].mxu1  ;;  %v1657_v62 = vmul.f32 1.442695, %v1582_v44  ;;  %v3191_v6 = vadd.f32 %v3040_v19, %v1448_v53 }
 0x156   : > { %2528 = vrcp.f32 %v1770_v41  ;;  %v2511_v60 = vpop.eup %2510  ;;  %v1895_v61 = vmul.f32 %v2509_v48, %v3085_v12  ;;  %v1721_v63 = vmul.f32 1.442695, %v1614_v45  ;;  %v1030_v0 = vpop.f32.mrb[26].mxu0  ;;  %v3194_v7 = vadd.f32 %v3040_v19, %v1480_v54 }
 0x157   : > { %2530 = vrcp.f32 %v1802_v35  ;;  %v1158_v1 = vpop.f32.mrb[26].mxu1  ;;  %v2513_v2 = vpop.eup %2512  ;;  %v1927_v3 = vmul.f32 %v2511_v60, %v3090_v21  ;;  %v1449_v11 = vmul.f32 %v3035_v17, %v1030_v0  ;;  %v1583_v15 = vsub.f32 0.0, %v3191_v6 }
 0x158   : > { %2532 = vpow2.f32 %v1655_v42  ;;  %v1032_v8 = vpop.f32.mrb[27].mxu0  ;;  %v1160_v9 = vpop.f32.mrb[27].mxu1  ;;  %1959 = vst [vmem:[%s3132_s14 + $0x20] sm:$0xff] %v1895_v61  ;;  %v1896_v10 = vmul.f32 %v2513_v2, %v3094_v25  ;;  %v1481_v21 = vmul.f32 %v3035_v17, %v1158_v1  ;;  %v1615_v16 = vsub.f32 0.0, %v3194_v7 }
 0x159   : > { %v2515_v12 = vpop.eup %2514  ;;  %2534 = vpow2.f32 %v1719_v43  ;;  %1991 = vst [vmem:[%s3132_s14 + $0x120] sm:$0xff] %v1927_v3  ;;  %v3206_v25 = vadd.f32 %v3040_v19, %v1449_v11  ;;  %v1659_v29 = vmul.f32 1.442695, %v1583_v15 }
 0x15a   : > { %v2517_v13 = vpop.eup %2516  ;;  %v1928_v14 = vmul.f32 %v2515_v12, %v3097_v26  ;;  %2536 = vpow2.f32 %v1657_v62  ;;  %1960 = vst [vmem:[%s3132_s14 + $0x28] sm:$0xff] %v1896_v10  ;;  %v3209_v23 = vadd.f32 %v3040_v19, %v1481_v21  ;;  %v1723_v26 = vmul.f32 1.442695, %v1615_v16  ;;  %v1035_v33 = vpop.f32.mrb[28].mxu0 }
 0x15b   : > { %v2519_v18 = vpop.eup %2518  ;;  %v1771_v51 = vadd.f32 1.0, %v2517_v13  ;;  %2538 = vpow2.f32 %v1721_v63  ;;  %v1584_v58 = vsub.f32 0.0, %v3206_v25  ;;  %v1163_v34 = vpop.f32.mrb[28].mxu1  ;;  %v1450_v40 = vmul.f32 %v3035_v17, %v1035_v33 }
 0x15c   : > { %v2521_v56 = vpop.eup %2520  ;;  %1992 = vst [vmem:[%s3132_s14 + $0x128] sm:$0xff] %v1928_v14  ;;  %v1803_v24 = vadd.f32 1.0, %v2519_v18  ;;  %v1616_v32 = vsub.f32 0.0, %v3209_v23  ;;  %v1482_v41 = vmul.f32 %v3035_v17, %v1163_v34  ;;  %v1037_v42 = vpop.f32.mrb[29].mxu0 }
 0x15d   : > { %v2523_v30 = vpop.eup %2522  ;;  %2540 = vrcp.f32 %v1771_v51  ;;  %v1772_v31 = vadd.f32 1.0, %v2521_v56  ;;  %v1165_v43 = vpop.f32.mrb[29].mxu1  ;;  %v1661_v45 = vmul.f32 1.442695, %v1584_v58  ;;  %v3219_v55 = vadd.f32 %v3040_v19, %v1450_v40 }
 0x15e   : > { %v2525_v27 = vpop.eup %2524  ;;  %2542 = vrcp.f32 %v1803_v24  ;;  %v1804_v38 = vadd.f32 1.0, %v2523_v30  ;;  %v1725_v46 = vmul.f32 1.442695, %v1616_v32  ;;  %v1038_v47 = vpop.f32.mrb[30].mxu0  ;;  %v3222_v57 = vadd.f32 %v3040_v19, %v1482_v41 }
 0x15f   : > { %v2527_v35 = vpop.eup %2526  ;;  %v1897_v44 = vmul.f32 %v2525_v27, %v3106_v50  ;;  %2544 = vrcp.f32 %v1772_v31  ;;  %v1166_v48 = vpop.f32.mrb[30].mxu1  ;;  %v1451_v63 = vmul.f32 %v3035_v17, %v1038_v47  ;;  %v1585_v2 = vsub.f32 0.0, %v3219_v55 }
 0x160   : > { %v2529_v53 = vpop.eup %2528  ;;  %v1929_v54 = vmul.f32 %v2527_v35, %v3109_v52  ;;  %2546 = vrcp.f32 %v1804_v38  ;;  %v1040_v60 = vpop.f32.mrb[31].mxu0  ;;  %v1483_v52 = vmul.f32 %v3035_v17, %v1166_v48  ;;  %v1617_v3 = vsub.f32 0.0, %v3222_v57 }
 0x161   : > { %v1168_v61 = vpop.f32.mrb[31].mxu1  ;;  %v2531_v50 = vpop.eup %2530  ;;  %1961 = vst [vmem:[%s3132_s14 + $0x30] sm:$0xff] %v1897_v44  ;;  %v1898_v62 = vmul.f32 %v2529_v53, %v3120_v4  ;;  %2548 = vpow2.f32 %v1659_v29  ;;  %v3234_v4 = vadd.f32 %v3040_v19, %v1451_v63 }
 0x162   : > { %v2533_v0 = vpop.eup %2532  ;;  %1993 = vst [vmem:[%s3132_s14 + $0x130] sm:$0xff] %v1929_v54  ;;  %v1930_v1 = vmul.f32 %v2531_v50, %v3123_v5  ;;  %2550 = vpow2.f32 %v1723_v26  ;;  %v3237_v12 = vadd.f32 %v3040_v19, %v1483_v52  ;;  %v1663_v5 = vmul.f32 1.442695, %v1585_v2  ;;  %v1043_v18 = vpop.f32.mrb[32].mxu0 }
 0x163   : > { %v2535_v8 = vpop.eup %2534  ;;  %1962 = vst [vmem:[%s3132_s14 + $0x38] sm:$0xff] %v1898_v62  ;;  %v1773_v9 = vadd.f32 1.0, %v2533_v0  ;;  %2552 = vpow2.f32 %v1661_v45  ;;  %v1727_v21 = vmul.f32 1.442695, %v1617_v3  ;;  %v1586_v15 = vsub.f32 0.0, %v3234_v4  ;;  %v1171_v51 = vpop.f32.mrb[32].mxu1 }
 0x164   : > { %v2537_v10 = vpop.eup %2536  ;;  %1994 = vst [vmem:[%s3132_s14 + $0x138] sm:$0xff] %v1930_v1  ;;  %v1805_v11 = vadd.f32 1.0, %v2535_v8  ;;  %2554 = vpow2.f32 %v1725_v46  ;;  %v1618_v16 = vsub.f32 0.0, %v3237_v12  ;;  %v1452_v24 = vmul.f32 %v3035_v17, %v1043_v18  ;;  %v1045_v26 = vpop.f32.mrb[33].mxu0 }
 0x165   : > { %v2539_v13 = vpop.eup %2538  ;;  %2556 = vrcp.f32 %v1773_v9  ;;  %v1774_v14 = vadd.f32 1.0, %v2537_v10  ;;  %v1484_v29 = vmul.f32 %v3035_v17, %v1171_v51  ;;  %v1173_v30 = vpop.f32.mrb[33].mxu1  ;;  %v1665_v58 = vmul.f32 1.442695, %v1586_v15 }
 0x166   : > { %2558 = vrcp.f32 %v1805_v11  ;;  %v1806_v56 = vadd.f32 1.0, %v2539_v13  ;;  %v1729_v32 = vmul.f32 1.442695, %v1618_v16  ;;  %v1046_v33 = vpop.f32.mrb[34].mxu0  ;;  %v1174_v34 = vpop.f32.mrb[34].mxu1  ;;  %v3246_v40 = vadd.f32 %v3040_v19, %v1452_v24 }
 0x167   : > { %v2541_v31 = vpop.eup %2540  ;;  %2560 = vrcp.f32 %v1774_v14  ;;  %v3249_v41 = vadd.f32 %v3040_v19, %v1484_v29  ;;  %v1048_v42 = vpop.f32.mrb[35].mxu0  ;;  %v1453_v45 = vmul.f32 %v3035_v17, %v1046_v33  ;;  %v1485_v46 = vmul.f32 %v3035_v17, %v1174_v34 }
 0x168   : > { %v2543_v27 = vpop.eup %2542  ;;  %v1899_v38 = vmul.f32 %v2541_v31, %v3137_v37  ;;  %2562 = vrcp.f32 %v1806_v56  ;;  %v1176_v43 = vpop.f32.mrb[35].mxu1  ;;  %v1587_v48 = vsub.f32 0.0, %v3246_v40 }
 0x169   : > { %v2545_v35 = vpop.eup %2544  ;;  %v1931_v44 = vmul.f32 %v2543_v27, %v3140_v28  ;;  %2564 = vpow2.f32 %v1663_v5  ;;  %v1619_v53 = vsub.f32 0.0, %v3249_v41  ;;  %v3261_v60 = vadd.f32 %v3040_v19, %v1453_v45 }
 0x16a   : > { %v2547_v37 = vpop.eup %2546  ;;  %1963 = vst [vmem:[%s3132_s14 + $0x40] sm:$0xff] %v1899_v38  ;;  %v1900_v47 = vmul.f32 %v2545_v35, %v3151_v49  ;;  %2566 = vpow2.f32 %v1727_v21  ;;  %v3264_v61 = vadd.f32 %v3040_v19, %v1485_v46  ;;  %v1667_v62 = vmul.f32 1.442695, %v1587_v48  ;;  %v1051_v2 = vpop.f32.mrb[36].mxu0 }
 0x16b   : > { %v2549_v54 = vpop.eup %2548  ;;  %1995 = vst [vmem:[%s3132_s14 + $0x140] sm:$0xff] %v1931_v44  ;;  %v1932_v28 = vmul.f32 %v2547_v37, %v3154_v36  ;;  %2568 = vpow2.f32 %v1665_v58  ;;  %v1731_v63 = vmul.f32 1.442695, %v1619_v53  ;;  %v1588_v1 = vsub.f32 0.0, %v3261_v60  ;;  %v1179_v3 = vpop.f32.mrb[36].mxu1 }
 0x16c   : > { %v2551_v50 = vpop.eup %2550  ;;  %1964 = vst [vmem:[%s3132_s14 + $0x48] sm:$0xff] %v1900_v47  ;;  %v1775_v49 = vadd.f32 1.0, %v2549_v54  ;;  %2570 = vpow2.f32 %v1729_v32  ;;  %v1620_v36 = vsub.f32 0.0, %v3264_v61  ;;  %v1454_v10 = vmul.f32 %v3035_v17, %v1051_v2  ;;  %v1053_v5 = vpop.f32.mrb[37].mxu0 }
 0x16d   : > { %v2553_v52 = vpop.eup %2552  ;;  %1996 = vst [vmem:[%s3132_s14 + $0x148] sm:$0xff] %v1932_v28  ;;  %v1807_v0 = vadd.f32 1.0, %v2551_v50  ;;  %v1486_v11 = vmul.f32 %v3035_v17, %v1179_v3  ;;  %v1181_v21 = vpop.f32.mrb[37].mxu1  ;;  %v1669_v15 = vmul.f32 1.442695, %v1588_v1 }
 0x16e   : > { %v2555_v8 = vpop.eup %2554  ;;  %2572 = vrcp.f32 %v1775_v49  ;;  %v1776_v9 = vadd.f32 1.0, %v2553_v52  ;;  %v1733_v16 = vmul.f32 1.442695, %v1620_v36  ;;  %v1054_v18 = vpop.f32.mrb[38].mxu0  ;;  %v3274_v24 = vadd.f32 %v3040_v19, %v1454_v10 }
 0x16f   : > { %v2557_v13 = vpop.eup %2556  ;;  %2574 = vrcp.f32 %v1807_v0  ;;  %v1808_v14 = vadd.f32 1.0, %v2555_v8  ;;  %v3277_v29 = vadd.f32 %v3040_v19, %v1486_v11  ;;  %v1182_v26 = vpop.f32.mrb[38].mxu1  ;;  %v1455_v32 = vmul.f32 %v3035_v17, %v1054_v18 }
 0x170   : > { %v2559_v51 = vpop.eup %2558  ;;  %v1901_v56 = vmul.f32 %v2557_v13, %v3165_v20  ;;  %2576 = vrcp.f32 %v1776_v9  ;;  %v1056_v30 = vpop.f32.mrb[39].mxu0  ;;  %v1487_v33 = vmul.f32 %v3035_v17, %v1182_v26  ;;  %v1589_v38 = vsub.f32 0.0, %v3274_v24 }
 0x171   : > { %v2561_v31 = vpop.eup %2560  ;;  %v1933_v58 = vmul.f32 %v2559_v51, %v3168_v22  ;;  %2578 = vrcp.f32 %v1808_v14  ;;  %v1184_v20 = vpop.f32.mrb[39].mxu1  ;;  %v1621_v42 = vsub.f32 0.0, %v3277_v29  ;;  %v3289_v35 = vadd.f32 %v3040_v19, %v1455_v32 }
 0x172   : > { %v2563_v34 = vpop.eup %2562  ;;  %1965 = vst [vmem:[%s3132_s14 + $0x50] sm:$0xff] %v1901_v56  ;;  %v1902_v27 = vmul.f32 %v2561_v31, %v3179_v39  ;;  %2580 = vpow2.f32 %v1667_v62  ;;  %v3292_v44 = vadd.f32 %v3040_v19, %v1487_v33  ;;  %v1671_v46 = vmul.f32 1.442695, %v1589_v38  ;;  %v1059_v53 = vpop.f32.mrb[40].mxu0 }
 0x173   : > { %v2565_v43 = vpop.eup %2564  ;;  %1997 = vst [vmem:[%s3132_s14 + $0x150] sm:$0xff] %v1933_v58  ;;  %v1934_v22 = vmul.f32 %v2563_v34, %v3182_v59  ;;  %2582 = vpow2.f32 %v1731_v63  ;;  %v1590_v48 = vsub.f32 0.0, %v3289_v35  ;;  %v1187_v54 = vpop.f32.mrb[40].mxu1  ;;  %v1456_v49 = vmul.f32 %v3035_v17, %v1059_v53 }
 0x174   : > { %v2567_v45 = vpop.eup %2566  ;;  %1966 = vst [vmem:[%s3132_s14 + $0x58] sm:$0xff] %v1902_v27  ;;  %v1777_v39 = vadd.f32 1.0, %v2565_v43  ;;  %2584 = vpow2.f32 %v1669_v15  ;;  %v1622_v59 = vsub.f32 0.0, %v3292_v44  ;;  %v1488_v62 = vmul.f32 %v3035_v17, %v1187_v54  ;;  %v1061_v63 = vpop.f32.mrb[41].mxu0 }
 0x175   : > { %v2569_v37 = vpop.eup %2568  ;;  %1998 = vst [vmem:[%s3132_s14 + $0x158] sm:$0xff] %v1934_v22  ;;  %v1809_v47 = vadd.f32 1.0, %v2567_v45  ;;  %2586 = vpow2.f32 %v1733_v16  ;;  %v1189_v52 = vpop.f32.mrb[41].mxu1  ;;  %v1735_v1 = vmul.f32 1.442695, %v1621_v42  ;;  %v3301_v8 = vadd.f32 %v3040_v19, %v1456_v49 }
 0x176   : > { %v2571_v28 = vpop.eup %2570  ;;  %2588 = vrcp.f32 %v1777_v39  ;;  %v1778_v50 = vadd.f32 1.0, %v2569_v37  ;;  %v1673_v36 = vmul.f32 1.442695, %v1590_v48  ;;  %v1062_v2 = vpop.f32.mrb[42].mxu0  ;;  %v3304_v9 = vadd.f32 %v3040_v19, %v1488_v62 }
 0x177   : > { %2590 = vrcp.f32 %v1809_v47  ;;  %v1810_v0 = vadd.f32 1.0, %v2571_v28  ;;  %v1457_v10 = vmul.f32 %v3035_v17, %v1062_v2  ;;  %v1190_v11 = vpop.f32.mrb[42].mxu1  ;;  %v1064_v5 = vpop.f32.mrb[43].mxu0  ;;  %v1737_v14 = vmul.f32 1.442695, %v1622_v59 }
 0x178   : > { %v2573_v3 = vpop.eup %2572  ;;  %2592 = vrcp.f32 %v1778_v50  ;;  %v1489_v15 = vmul.f32 %v3035_v17, %v1190_v11  ;;  %v1192_v16 = vpop.f32.mrb[43].mxu1  ;;  %v1591_v56 = vsub.f32 0.0, %v3301_v8  ;;  %v1623_v26 = vsub.f32 0.0, %v3304_v9 }
 0x179   : > { %v2575_v21 = vpop.eup %2574  ;;  %v1903_v13 = vmul.f32 %v2573_v3, %v3191_v6  ;;  %2594 = vrcp.f32 %v1810_v0  ;;  %v3315_v6 = vadd.f32 %v3040_v19, %v1457_v10 }
 0x17a   : > { %v2577_v18 = vpop.eup %2576  ;;  %v1935_v51 = vmul.f32 %v2575_v21, %v3194_v7  ;;  %2596 = vpow2.f32 %v1671_v46  ;;  %v3318_v58 = vadd.f32 %v3040_v19, %v1489_v15  ;;  %v1675_v33 = vmul.f32 1.442695, %v1591_v56  ;;  %v1067_v42 = vpop.f32.mrb[44].mxu0 }
 0x17b   : > { %v2579_v30 = vpop.eup %2578  ;;  %1967 = vst [vmem:[%s3132_s14 + $0x60] sm:$0xff] %v1903_v13  ;;  %v1904_v31 = vmul.f32 %v2577_v18, %v3206_v25  ;;  %2598 = vpow2.f32 %v1735_v1  ;;  %v1739_v20 = vmul.f32 1.442695, %v1623_v26  ;;  %v1592_v25 = vsub.f32 0.0, %v3315_v6  ;;  %v1195_v43 = vpop.f32.mrb[44].mxu1 }
 0x17c   : > { %v2581_v32 = vpop.eup %2580  ;;  %1999 = vst [vmem:[%s3132_s14 + $0x160] sm:$0xff] %v1935_v51  ;;  %v1936_v7 = vmul.f32 %v2579_v30, %v3209_v23  ;;  %2600 = vpow2.f32 %v1673_v36  ;;  %v1624_v38 = vsub.f32 0.0, %v3318_v58  ;;  %v1458_v39 = vmul.f32 %v3035_v17, %v1067_v42  ;;  %v1069_v46 = vpop.f32.mrb[45].mxu0  ;;  %v3338_v1 = vld [vmem:[%s3567_s2] ss:$0 sm:$0xff] }
 0x17d   : > { %v2583_v34 = vpop.eup %2582  ;;  %1968 = vst [vmem:[%s3132_s14 + $0x68] sm:$0xff] %v1904_v31  ;;  %v1779_v27 = vadd.f32 1.0, %v2581_v32  ;;  %2602 = vpow2.f32 %v1737_v14  ;;  %v1490_v23 = vmul.f32 %v3035_v17, %v1195_v43  ;;  %v1197_v37 = vpop.f32.mrb[45].mxu1  ;;  %v1677_v59 = vmul.f32 1.442695, %v1592_v25 }
 0x17e   : > { %v2585_v22 = vpop.eup %2584  ;;  %2000 = vst [vmem:[%s3132_s14 + $0x168] sm:$0xff] %v1936_v7  ;;  %v1811_v45 = vadd.f32 1.0, %v2583_v34  ;;  %2604 = vpow2.f32 %v1675_v33  ;;  %v1741_v53 = vmul.f32 1.442695, %v1624_v38  ;;  %v1070_v54 = vpop.f32.mrb[46].mxu0  ;;  %v3329_v49 = vadd.f32 %v3040_v19, %v1458_v39 }
 0x17f   : > { %v2587_v47 = vpop.eup %2586  ;;  %2606 = vrcp.f32 %v1779_v27  ;;  %v1780_v48 = vadd.f32 1.0, %v2585_v22  ;;  %v3332_v62 = vadd.f32 %v3040_v19, %v1490_v23  ;;  %v1198_v63 = vpop.f32.mrb[46].mxu1  ;;  %v1459_v36 = vmul.f32 %v3338_v1, %v1070_v54  ;;  %v3350_v13 = vld [vmem:[%s3568_s3] ss:$0 sm:$0xff] }
 0x180   : > { %v2589_v28 = vpop.eup %2588  ;;  %2608 = vrcp.f32 %v1811_v45  ;;  %v1812_v50 = vadd.f32 1.0, %v2587_v47  ;;  %v1072_v17 = vpop.f32.mrb[47].mxu0  ;;  %v1491_v2 = vmul.f32 %v3338_v1, %v1198_v63  ;;  %v1593_v11 = vsub.f32 0.0, %v3329_v49 }
 0x181   : > { %v2591_v52 = vpop.eup %2590  ;;  %v1905_v0 = vmul.f32 %v2589_v28, %v3219_v55  ;;  %2610 = vrcp.f32 %v1780_v48  ;;  %v1200_v3 = vpop.f32.mrb[47].mxu1  ;;  %v1625_v55 = vsub.f32 0.0, %v3332_v62  ;;  %v3353_v14 = vadd.f32 %v3350_v13, %v1459_v36 }
 0x182   : > { %v2593_v19 = vpop.eup %2592  ;;  %v1937_v10 = vmul.f32 %v2591_v52, %v3222_v57  ;;  %2612 = vrcp.f32 %v1812_v50  ;;  %v3356_v57 = vadd.f32 %v3350_v13, %v1491_v2  ;;  %v1679_v18 = vmul.f32 1.442695, %v1593_v11  ;;  %v1075_v31 = vpop.f32.mrb[48].mxu0 }
 0x183   : > { %v2595_v5 = vpop.eup %2594  ;;  %1969 = vst [vmem:[%s3132_s14 + $0x70] sm:$0xff] %v1905_v0  ;;  %v1906_v21 = vmul.f32 %v2593_v19, %v3234_v4  ;;  %2614 = vpow2.f32 %v1739_v20  ;;  %v1743_v4 = vmul.f32 1.442695, %v1625_v55  ;;  %v1594_v26 = vsub.f32 0.0, %v3353_v14  ;;  %v1203_v32 = vpop.f32.mrb[48].mxu1 }
 0x184   : > { %v2597_v15 = vpop.eup %2596  ;;  %2001 = vst [vmem:[%s3132_s14 + $0x170] sm:$0xff] %v1937_v10  ;;  %v1938_v16 = vmul.f32 %v2595_v5, %v3237_v12  ;;  %2616 = vpow2.f32 %v1677_v59  ;;  %v1626_v30 = vsub.f32 0.0, %v3356_v57  ;;  %v1460_v20 = vmul.f32 %v3338_v1, %v1075_v31  ;;  %v1077_v34 = vpop.f32.mrb[49].mxu0 }
 0x185   : > { %v2599_v51 = vpop.eup %2598  ;;  %1970 = vst [vmem:[%s3132_s14 + $0x78] sm:$0xff] %v1906_v21  ;;  %v1781_v56 = vadd.f32 1.0, %v2597_v15  ;;  %2618 = vpow2.f32 %v1741_v53  ;;  %v1492_v12 = vmul.f32 %v3338_v1, %v1203_v32  ;;  %v1205_v27 = vpop.f32.mrb[49].mxu1  ;;  %v1681_v42 = vmul.f32 1.442695, %v1594_v26 }
 0x186   : > { %v2601_v7 = vpop.eup %2600  ;;  %2002 = vst [vmem:[%s3132_s14 + $0x178] sm:$0xff] %v1938_v16  ;;  %v1813_v33 = vadd.f32 1.0, %v2599_v51  ;;  %2620 = vpow2.f32 %v1679_v18  ;;  %v1745_v43 = vmul.f32 1.442695, %v1626_v30  ;;  %v1078_v22 = vpop.f32.mrb[50].mxu0  ;;  %v3367_v23 = vadd.f32 %v3350_v13, %v1460_v20 }
 0x187   : > { %v2603_v25 = vpop.eup %2602  ;;  %2622 = vrcp.f32 %v1781_v56  ;;  %v1782_v38 = vadd.f32 1.0, %v2601_v7  ;;  %v3370_v46 = vadd.f32 %v3350_v13, %v1492_v12  ;;  %v1206_v37 = vpop.f32.mrb[50].mxu1  ;;  %v1461_v53 = vmul.f32 %v3338_v1, %v1078_v22 }
 0x188   : > { %v2605_v45 = vpop.eup %2604  ;;  %2624 = vrcp.f32 %v1813_v33  ;;  %v1814_v39 = vadd.f32 1.0, %v2603_v25  ;;  %v1080_v47 = vpop.f32.mrb[51].mxu0  ;;  %v1493_v54 = vmul.f32 %v3338_v1, %v1206_v37  ;;  %v1595_v17 = vsub.f32 0.0, %v3367_v23 }
 0x189   : > { %v2607_v48 = vpop.eup %2606  ;;  %2626 = vrcp.f32 %v1782_v38  ;;  %v1783_v59 = vadd.f32 1.0, %v2605_v45  ;;  %v1208_v28 = vpop.f32.mrb[51].mxu1  ;;  %v1627_v52 = vsub.f32 0.0, %v3370_v46  ;;  %v3379_v2 = vadd.f32 %v3350_v13, %v1461_v53 }
 0x18a   : > { %v2609_v50 = vpop.eup %2608  ;;  %v1907_v63 = vmul.f32 %v2607_v48, %v3246_v40  ;;  %2628 = vrcp.f32 %v1814_v39  ;;  %v3382_v3 = vadd.f32 %v3350_v13, %v1493_v54  ;;  %v1683_v10 = vmul.f32 1.442695, %v1595_v17  ;;  %v1083_v15 = vpop.f32.mrb[52].mxu0 }
 0x18b   : > { %v2611_v0 = vpop.eup %2610  ;;  %v1939_v36 = vmul.f32 %v2609_v50, %v3249_v41  ;;  %2630 = vrcp.f32 %v1783_v59  ;;  %v1747_v11 = vmul.f32 1.442695, %v1627_v52  ;;  %v1596_v5 = vsub.f32 0.0, %v3379_v2  ;;  %v1211_v16 = vpop.f32.mrb[52].mxu1 }
 0x18c   : > { %v2613_v19 = vpop.eup %2612  ;;  %1971 = vst [vmem:[%s3132_s14 + $0x80] sm:$0xff] %v1907_v63  ;;  %v1908_v40 = vmul.f32 %v2611_v0, %v3261_v60  ;;  %2632 = vpow2.f32 %v1743_v4  ;;  %v1628_v21 = vsub.f32 0.0, %v3382_v3  ;;  %v1462_v60 = vmul.f32 %v3338_v1, %v1083_v15  ;;  %v1085_v56 = vpop.f32.mrb[53].mxu0 }
 0x18d   : > { %v2615_v55 = vpop.eup %2614  ;;  %2003 = vst [vmem:[%s3132_s14 + $0x180] sm:$0xff] %v1939_v36  ;;  %v1940_v41 = vmul.f32 %v2613_v19, %v3264_v61  ;;  %2634 = vpow2.f32 %v1681_v42  ;;  %v1494_v4 = vmul.f32 %v3338_v1, %v1211_v16  ;;  %v1213_v26 = vpop.f32.mrb[53].mxu1  ;;  %v1685_v31 = vmul.f32 1.442695, %v1596_v5 }
 0x18e   : > { %v2617_v18 = vpop.eup %2616  ;;  %1972 = vst [vmem:[%s3132_s14 + $0x88] sm:$0xff] %v1908_v40  ;;  %v1815_v51 = vadd.f32 1.0, %v2615_v55  ;;  %2636 = vpow2.f32 %v1745_v43  ;;  %v1749_v32 = vmul.f32 1.442695, %v1628_v21  ;;  %v1086_v7 = vpop.f32.mrb[54].mxu0  ;;  %v3395_v12 = vadd.f32 %v3350_v13, %v1462_v60 }
 0x18f   : > { %v2619_v30 = vpop.eup %2618  ;;  %2004 = vst [vmem:[%s3132_s14 + $0x188] sm:$0xff] %v1940_v41  ;;  %v1784_v61 = vadd.f32 1.0, %v2617_v18  ;;  %2638 = vpow2.f32 %v1683_v10  ;;  %v3398_v34 = vadd.f32 %v3350_v13, %v1494_v4  ;;  %v1214_v27 = vpop.f32.mrb[54].mxu1  ;;  %v1463_v43 = vmul.f32 %v3338_v1, %v1086_v7 }
 0x190   : > { %v2621_v33 = vpop.eup %2620  ;;  %2640 = vrcp.f32 %v1815_v51  ;;  %v1816_v20 = vadd.f32 1.0, %v2619_v30  ;;  %v1088_v25 = vpop.f32.mrb[55].mxu0  ;;  %v1495_v22 = vmul.f32 %v3338_v1, %v1214_v27  ;;  %v1597_v47 = vsub.f32 0.0, %v3395_v12 }
 0x191   : > { %v2623_v38 = vpop.eup %2622  ;;  %2642 = vrcp.f32 %v1784_v61  ;;  %v1785_v42 = vadd.f32 1.0, %v2621_v33  ;;  %v1216_v45 = vpop.f32.mrb[55].mxu1  ;;  %v1629_v48 = vsub.f32 0.0, %v3398_v34  ;;  %v3407_v54 = vadd.f32 %v3350_v13, %v1463_v43 }
 0x192   : > { %v2625_v39 = vpop.eup %2624  ;;  %v1909_v37 = vmul.f32 %v2623_v38, %v3274_v24  ;;  %2644 = vrcp.f32 %v1816_v20  ;;  %v3410_v28 = vadd.f32 %v3350_v13, %v1495_v22  ;;  %v1687_v63 = vmul.f32 1.442695, %v1597_v47  ;;  %v1091_v19 = vpop.f32.mrb[56].mxu0 }
 0x193   : > { %v2627_v59 = vpop.eup %2626  ;;  %v1941_v53 = vmul.f32 %v2625_v39, %v3277_v29  ;;  %2646 = vrcp.f32 %v1785_v42  ;;  %v1751_v17 = vmul.f32 1.442695, %v1629_v48  ;;  %v1598_v0 = vsub.f32 0.0, %v3407_v54  ;;  %v1219_v40 = vpop.f32.mrb[56].mxu1 }
 0x194   : > { %v2629_v50 = vpop.eup %2628  ;;  %1973 = vst [vmem:[%s3132_s14 + $0x90] sm:$0xff] %v1909_v37  ;;  %v1910_v24 = vmul.f32 %v2627_v59, %v3289_v35  ;;  %2648 = vpow2.f32 %v1747_v11  ;;  %v1630_v36 = vsub.f32 0.0, %v3410_v28  ;;  %v1464_v11 = vmul.f32 %v3338_v1, %v1091_v19  ;;  %v1093_v41 = vpop.f32.mrb[57].mxu0 }
 0x195   : > { %v2631_v52 = vpop.eup %2630  ;;  %2005 = vst [vmem:[%s3132_s14 + $0x190] sm:$0xff] %v1941_v53  ;;  %v1942_v29 = vmul.f32 %v2629_v50, %v3292_v44  ;;  %2650 = vpow2.f32 %v1685_v31  ;;  %v1496_v55 = vmul.f32 %v3338_v1, %v1219_v40  ;;  %v1221_v5 = vpop.f32.mrb[57].mxu1  ;;  %v1689_v15 = vmul.f32 1.442695, %v1598_v0 }
 0x196   : > { %v2633_v10 = vpop.eup %2632  ;;  %1974 = vst [vmem:[%s3132_s14 + $0x98] sm:$0xff] %v1910_v24  ;;  %v1911_v35 = vmul.f32 %v2631_v52, %v3301_v8  ;;  %2652 = vpow2.f32 %v1749_v32  ;;  %v1753_v16 = vmul.f32 1.442695, %v1630_v36  ;;  %v1094_v18 = vpop.f32.mrb[58].mxu0  ;;  %v3425_v8 = vadd.f32 %v3350_v13, %v1464_v11 }
 0x197   : > { %v2635_v44 = vpop.eup %2634  ;;  %2006 = vst [vmem:[%s3132_s14 + $0x198] sm:$0xff] %v1942_v29  ;;  %v1817_v21 = vadd.f32 1.0, %v2633_v10  ;;  %2654 = vpow2.f32 %v1687_v63  ;;  %v3428_v4 = vadd.f32 %v3350_v13, %v1496_v55  ;;  %v1222_v56 = vpop.f32.mrb[58].mxu1  ;;  %v1465_v31 = vmul.f32 %v3338_v1, %v1094_v18 }
 0x198   : > { %v2637_v51 = vpop.eup %2636  ;;  %1975 = vst [vmem:[%s3132_s14 + $0xa0] sm:$0xff] %v1911_v35  ;;  %v1786_v60 = vadd.f32 1.0, %v2635_v44  ;;  %2656 = vpow2.f32 %v1751_v17  ;;  %v1096_v26 = vpop.f32.mrb[59].mxu0  ;;  %v1497_v32 = vmul.f32 %v3338_v1, %v1222_v56  ;;  %v1599_v27 = vsub.f32 0.0, %v3425_v8 }
 0x199   : > { %v2639_v30 = vpop.eup %2638  ;;  %2658 = vrcp.f32 %v1817_v21  ;;  %v1818_v61 = vadd.f32 1.0, %v2637_v51  ;;  %v1224_v7 = vpop.f32.mrb[59].mxu1  ;;  %v1631_v25 = vsub.f32 0.0, %v3428_v4  ;;  %v3436_v43 = vadd.f32 %v3350_v13, %v1465_v31 }
 0x19a   : > { %v2641_v33 = vpop.eup %2640  ;;  %2660 = vrcp.f32 %v1786_v60  ;;  %v1787_v20 = vadd.f32 1.0, %v2639_v30  ;;  %v3439_v22 = vadd.f32 %v3350_v13, %v1497_v32  ;;  %v1691_v37 = vmul.f32 1.442695, %v1599_v27  ;;  %v1099_v50 = vpop.f32.mrb[60].mxu0 }
 0x19b   : > { %v2643_v38 = vpop.eup %2642  ;;  %v1943_v42 = vmul.f32 %v2641_v33, %v3304_v9  ;;  %2662 = vrcp.f32 %v1818_v61  ;;  %v1755_v47 = vmul.f32 1.442695, %v1631_v25  ;;  %v1600_v9 = vsub.f32 0.0, %v3436_v43  ;;  %v1227_v24 = vpop.f32.mrb[60].mxu1 }
 0x19c   : > { %v2645_v45 = vpop.eup %2644  ;;  %v1912_v39 = vmul.f32 %v2643_v38, %v3315_v6  ;;  %2664 = vrcp.f32 %v1787_v20  ;;  %v1632_v53 = vsub.f32 0.0, %v3439_v22  ;;  %v1466_v17 = vmul.f32 %v3338_v1, %v1099_v50  ;;  %v1101_v29 = vpop.f32.mrb[61].mxu0 }
 0x19d   : > { %v2647_v48 = vpop.eup %2646  ;;  %2007 = vst [vmem:[%s3132_s14 + $0x1a0] sm:$0xff] %v1943_v42  ;;  %v1944_v59 = vmul.f32 %v2645_v45, %v3318_v58  ;;  %2666 = vpow2.f32 %v1689_v15  ;;  %v1498_v52 = vmul.f32 %v3338_v1, %v1227_v24  ;;  %v1229_v0 = vpop.f32.mrb[61].mxu1  ;;  %v1693_v19 = vmul.f32 1.442695, %v1600_v9 }
 0x19e   : > { %v2649_v63 = vpop.eup %2648  ;;  %1976 = vst [vmem:[%s3132_s14 + $0xa8] sm:$0xff] %v1912_v39  ;;  %v1913_v6 = vmul.f32 %v2647_v48, %v3329_v49  ;;  %2668 = vpow2.f32 %v1753_v16  ;;  %v1757_v40 = vmul.f32 1.442695, %v1632_v53  ;;  %v1102_v10 = vpop.f32.mrb[62].mxu0  ;;  %v3453_v49 = vadd.f32 %v3350_v13, %v1466_v17 }
 0x19f   : > { %v2651_v58 = vpop.eup %2650  ;;  %2008 = vst [vmem:[%s3132_s14 + $0x1a8] sm:$0xff] %v1944_v59  ;;  %v1819_v36 = vadd.f32 1.0, %v2649_v63  ;;  %2670 = vpow2.f32 %v1691_v37  ;;  %v3456_v55 = vadd.f32 %v3350_v13, %v1498_v52  ;;  %v1230_v41 = vpop.f32.mrb[62].mxu1  ;;  %v1467_v15 = vmul.f32 %v3338_v1, %v1102_v10 }
 0x1a0   : > { %v2653_v35 = vpop.eup %2652  ;;  %1977 = vst [vmem:[%s3132_s14 + $0xb0] sm:$0xff] %v1913_v6  ;;  %v1788_v11 = vadd.f32 1.0, %v2651_v58  ;;  %2672 = vpow2.f32 %v1755_v47  ;;  %v1104_v5 = vpop.f32.mrb[63].mxu0  ;;  %v1499_v16 = vmul.f32 %v3338_v1, %v1230_v41  ;;  %v1601_v56 = vsub.f32 0.0, %v3453_v49 }
 0x1a1   : > { %v2655_v44 = vpop.eup %2654  ;;  %2674 = vrcp.f32 %v1819_v36  ;;  %v1820_v21 = vadd.f32 1.0, %v2653_v35  ;;  %v1232_v18 = vpop.f32.mrb[63].mxu1  ;;  %v1633_v26 = vsub.f32 0.0, %v3456_v55  ;;  %v3463_v31 = vadd.f32 %v3350_v13, %v1467_v15 }
 0x1a2   : > { %v2657_v51 = vpop.eup %2656  ;;  %2676 = vrcp.f32 %v1788_v11  ;;  %v1789_v60 = vadd.f32 1.0, %v2655_v44  ;;  %v3466_v32 = vadd.f32 %v3350_v13, %v1499_v16  ;;  %v1695_v33 = vmul.f32 1.442695, %v1601_v56 }
 0x1a3   : > { %v2659_v30 = vpop.eup %2658  ;;  %2678 = vrcp.f32 %v1820_v21  ;;  %v1821_v61 = vadd.f32 1.0, %v2657_v51  ;;  %v1759_v25 = vmul.f32 1.442695, %v1633_v26  ;;  %v1602_v13 = vsub.f32 0.0, %v3463_v31 }
 0x1a4   : > { %v2661_v1 = vpop.eup %2660  ;;  %v1945_v7 = vmul.f32 %v2659_v30, %v3332_v62  ;;  %2680 = vrcp.f32 %v1789_v60  ;;  %v1634_v39 = vsub.f32 0.0, %v3466_v32 }
 0x1a5   : > { %v2663_v20 = vpop.eup %2662  ;;  %v1914_v27 = vmul.f32 %v2661_v1, %v3353_v14  ;;  %2682 = vrcp.f32 %v1821_v61  ;;  %v1697_v9 = vmul.f32 1.442695, %v1602_v13 }
 0x1a6   : > { %v2665_v38 = vpop.eup %2664  ;;  %2009 = vst [vmem:[%s3132_s14 + $0x1b0] sm:$0xff] %v1945_v7  ;;  %v1946_v42 = vmul.f32 %v2663_v20, %v3356_v57  ;;  %2684 = vpow2.f32 %v1693_v19  ;;  %v1761_v50 = vmul.f32 1.442695, %v1634_v39 }
 0x1a7   : > { %v2667_v45 = vpop.eup %2666  ;;  %1978 = vst [vmem:[%s3132_s14 + $0xb8] sm:$0xff] %v1914_v27  ;;  %v1915_v62 = vmul.f32 %v2665_v38, %v3367_v23  ;;  %2686 = vpow2.f32 %v1757_v40 }
 0x1a8   : > { %v2669_v37 = vpop.eup %2668  ;;  %2010 = vst [vmem:[%s3132_s14 + $0x1b8] sm:$0xff] %v1946_v42  ;;  %v1790_v14 = vadd.f32 1.0, %v2667_v45  ;;  %2688 = vpow2.f32 %v1695_v33 }
 0x1a9   : > { %v2671_v47 = vpop.eup %2670  ;;  %1979 = vst [vmem:[%s3132_s14 + $0xc0] sm:$0xff] %v1915_v62  ;;  %v1822_v48 = vadd.f32 1.0, %v2669_v37  ;;  %2690 = vpow2.f32 %v1759_v25 }
 0x1aa   : > { %v2673_v57 = vpop.eup %2672  ;;  %2692 = vrcp.f32 %v1790_v14  ;;  %v1791_v59 = vadd.f32 1.0, %v2671_v47 }
 0x1ab   : > { %v2675_v53 = vpop.eup %2674  ;;  %2694 = vrcp.f32 %v1822_v48  ;;  %v1823_v23 = vadd.f32 1.0, %v2673_v57 }
 0x1ac   : > { %v2677_v24 = vpop.eup %2676  ;;  %v1947_v63 = vmul.f32 %v2675_v53, %v3370_v46  ;;  %2696 = vrcp.f32 %v1791_v59 }
 0x1ad   : > { %v2679_v6 = vpop.eup %2678  ;;  %v1916_v17 = vmul.f32 %v2677_v24, %v3379_v2  ;;  %2698 = vrcp.f32 %v1823_v23 }
 0x1ae   : > { %v2681_v52 = vpop.eup %2680  ;;  %2011 = vst [vmem:[%s3132_s14 + $0x1c0] sm:$0xff] %v1947_v63  ;;  %v1948_v29 = vmul.f32 %v2679_v6, %v3382_v3  ;;  %2700 = vpow2.f32 %v1697_v9 }
 0x1af   : > { %v2683_v0 = vpop.eup %2682  ;;  %1980 = vst [vmem:[%s3132_s14 + $0xc8] sm:$0xff] %v1916_v17  ;;  %v1917_v58 = vmul.f32 %v2681_v52, %v3395_v12  ;;  %2702 = vpow2.f32 %v1761_v50 }
 0x1b0   : > { %v2685_v36 = vpop.eup %2684  ;;  %2012 = vst [vmem:[%s3132_s14 + $0x1c8] sm:$0xff] %v1948_v29  ;;  %v1949_v46 = vmul.f32 %v2683_v0, %v3398_v34 }
 0x1b1   : > { %v2687_v19 = vpop.eup %2686  ;;  %1981 = vst [vmem:[%s3132_s14 + $0xd0] sm:$0xff] %v1917_v58  ;;  %v1792_v40 = vadd.f32 1.0, %v2685_v36 }
 0x1b2   : > { %v2689_v2 = vpop.eup %2688  ;;  %2013 = vst [vmem:[%s3132_s14 + $0x1d0] sm:$0xff] %v1949_v46  ;;  %v1824_v10 = vadd.f32 1.0, %v2687_v19 }
 0x1b3   : > { %v2691_v35 = vpop.eup %2690  ;;  %2704 = vrcp.f32 %v1792_v40  ;;  %v1793_v3 = vadd.f32 1.0, %v2689_v2 }
 0x1b4   : > { %v2693_v11 = vpop.eup %2692  ;;  %2706 = vrcp.f32 %v1824_v10  ;;  %v1825_v12 = vadd.f32 1.0, %v2691_v35 }
 0x1b5   : > { %v2695_v41 = vpop.eup %2694  ;;  %v1918_v5 = vmul.f32 %v2693_v11, %v3407_v54  ;;  %2708 = vrcp.f32 %v1793_v3 }
 0x1b6   : > { %v2697_v34 = vpop.eup %2696  ;;  %v1950_v44 = vmul.f32 %v2695_v41, %v3410_v28  ;;  %2710 = vrcp.f32 %v1825_v12 }
 0x1b7   : > { %v2699_v21 = vpop.eup %2698  ;;  %1982 = vst [vmem:[%s3132_s14 + $0xd8] sm:$0xff] %v1918_v5  ;;  %v1919_v15 = vmul.f32 %v2697_v34, %v3425_v8 }
 0x1b8   : > { %v2701_v16 = vpop.eup %2700  ;;  %2014 = vst [vmem:[%s3132_s14 + $0x1d8] sm:$0xff] %v1950_v44  ;;  %v1951_v18 = vmul.f32 %v2699_v21, %v3428_v4 }
 0x1b9   : > { %v2703_v51 = vpop.eup %2702  ;;  %1983 = vst [vmem:[%s3132_s14 + $0xe0] sm:$0xff] %v1919_v15  ;;  %v1794_v60 = vadd.f32 1.0, %v2701_v16 }
 0x1ba   : > { %2015 = vst [vmem:[%s3132_s14 + $0x1e0] sm:$0xff] %v1951_v18  ;;  %v1826_v54 = vadd.f32 1.0, %v2703_v51 }
 0x1bb   : > { %2712 = vrcp.f32 %v1794_v60 }
 0x1bc   : > { %2714 = vrcp.f32 %v1826_v54 }
 0x1bd   : > { %v2705_v28 = vpop.eup %2704 }
 0x1be   : > { %v2707_v56 = vpop.eup %2706  ;;  %v1920_v8 = vmul.f32 %v2705_v28, %v3436_v43 }
 0x1bf   : > { %v2709_v26 = vpop.eup %2708  ;;  %v1952_v30 = vmul.f32 %v2707_v56, %v3439_v22 }
 0x1c0   : > { %v2711_v4 = vpop.eup %2710  ;;  %1984 = vst [vmem:[%s3132_s14 + $0xe8] sm:$0xff] %v1920_v8  ;;  %v1921_v61 = vmul.f32 %v2709_v26, %v3453_v49 }
 0x1c1   : > { %2016 = vst [vmem:[%s3132_s14 + $0x1e8] sm:$0xff] %v1952_v30  ;;  %v1953_v1 = vmul.f32 %v2711_v4, %v3456_v55 }
 0x1c2   : > { %1985 = vst [vmem:[%s3132_s14 + $0xf0] sm:$0xff] %v1921_v61 }
 0x1c3   : > { %2017 = vst [vmem:[%s3132_s14 + $0x1f0] sm:$0xff] %v1953_v1 }
 0x1c5   : > { %v2713_v7 = vpop.eup %2712 }
 0x1c6   : > { %v2715_v43 = vpop.eup %2714  ;;  %v1922_v33 = vmul.f32 %v2713_v7, %v3463_v31 }
 0x1c7   : > { %v1954_v22 = vmul.f32 %v2715_v43, %v3466_v32 }
 0x1c8   : > { %1986 = vst [vmem:[%s3132_s14 + $0xf8] sm:$0xff] %v1922_v33 }
 0x1c9   : > { %2018 = vst [vmem:[%s3132_s14 + $0x1f8] sm:$0xff] %v1954_v22 }
 0x1ca   : > { %2731 = shalt.err (!%p2728_p5)
}
 0x1cb   : > { %s2732_s24 = scalar_lea.hbm %s3510_s8, 8192  ;;  %s2736_s21 = scalar_lea.hbm %s3569_s4, 16384 }
 0x1cc   : > { %p2733_p6 = scmp.ne.s32.totalorder %s3510_s8, %s2732_s24  ;;  %p2737_p10 = scmp.lt.u32.totalorder %s3510_s8, %s3569_s4 }
 0x1cd   : > { %p2738_p11 = scmp.lt.u32.totalorder %s2736_s21, %s2732_s24  ;;  %p2740_p13 = scmp.lt.u32.totalorder %s2732_s24, %s3510_s8 }
 0x1ce   : > { %p2734_p7 = pnand %p2733_p6, %p2867_p4 }
 0x1cf   : > { %p2739_p12 = por %p2738_p11, %p2737_p10 }
 0x1d0   : > { %p2735_p9 = pneg %p2734_p7 }
 0x1d1   : > { %p2741_p0 = por %p2740_p13, %p2739_p12 }
 0x1d3   : > { %p2742_p1 = pnand %p2741_p0, %p2735_p9 }
 0x1d5   : > { %2745 = shalt.err (!%p2742_p1)
}
 0x1d6   : > { %s2800_s29 = smov 128   ;;  %s2801_s30 = smov 8  }
 0x1d7   : > { %2290 = dma.vmem_to_hbm [thread:$0]  (%p2867_p4), %s3512_s5, 8192, %s3510_s8, %s3519_s18, %s2800_s29, %s2800_s29, %s2801_s30  }
 0x1d8 PF: > { %p2296_p2 = scmp.ge.s32.totalorder %s2796_s20, 2  ;;  %s2049_s6 = sand.u32 1, %s2776_s15  }
 0x1d9   : > { %s2050_s7 = scalar_lea.sflag [#allocation4], %s2049_s6 }
 0x1da   : > { %p2293_p3 = pnand %p2296_p2, %p2874_p8 }
 0x1dc   : > { %2771 = dma.done.wait (!%p2293_p3), %s2050_s7, 8192  }
 0x1dd   : > { %2773 = vsyncadd (!%p2293_p3), %s2050_s7, 4294959104  ;;  %s17_s20 = sadd.s32 1, %s2796_s20   ;;  %s3572_s15 = smov %s2780_s16 }
 0x1de   : > { %p14_p5 = scmp.ge.s32.totalorder %s17_s20, 4   ;;  %s3573_s16 = smov %s2784_s17 }
 0x1df   : > { %s3574_s17 = smov %s2880_s28  ;;  %s3575_s18 = smov %s2792_s19 }
 0x1e0   : > { %s3576_s19 = smov %s3578_s23  ;;  %16 = sbr.rel (!%p14_p5) target bundleno = 4 (0x4), region = 88 }
 0x1e7   :  { %2055 = vsyncpa [#allocation4], 1 }
 0x1e8   :  { %2057 = vsyncpa [#allocation4 + $0x1], 1 }

</bundles_post_ra>
